<compile_context>
chip_gen: v7x
topology: tpu7x:2x2x1
jax: 0.10.0
libtpu: 0.0.40
codegen_flags: <defaults>
</compile_context>

<pallas_src>
import functools
import math

import jax
import jax.numpy as jnp
from jax import lax
from jax.experimental import pallas as pl
from jax.experimental.pallas import tpu as pltpu

_COMPUTE_DT = jnp.bfloat16            # MXU input dtype (f32 accumulation)
_LN_EPS = 1e-5                        # nn.LayerNorm default
_NEG_INF = -1e20                      # matches masked_fill(mask == 0, -1e20)

_MM2_DIMS = (((1,), (0,)), ((), ()))        # (m,k) x (k,n)
_MM3_DIMS = (((2,), (0,)), ((), ()))        # (b,m,k) x (k,n)
_BQK_DIMS = (((2,), (2,)), ((0,), (0,)))    # (b,q,d) . (b,k,d) -> (b,q,k)
_BPV_DIMS = (((2,), (1,)), ((0,), (0,)))    # (b,q,k) . (b,k,d) -> (b,q,d)

_LAYER_WEIGHT_KEYS = (
    'wq1', 'wk1', 'wv1', 'wo1', 'bo1', 'ln0g', 'ln0b',
    'wq2', 'wk2', 'wv2', 'wo2', 'bo2', 'ln1g', 'ln1b',
    'w1', 'fb1', 'w2', 'fb2', 'ln2g', 'ln2b',
)


# ----------------------------------------------------------------------------
# Fused whole-decoder kernel: one grid step = one DecoderBlock for one batch block
# ----------------------------------------------------------------------------

def _decoder_stack_kernel(
    x0_ref, enc_ref, tb_ref, sb_ref,
    wq1_ref, wk1_ref, wv1_ref, wo1_ref, bo1_ref, ln0g_ref, ln0b_ref,
    wq2_ref, wk2_ref, wv2_ref, wo2_ref, bo2_ref, ln1g_ref, ln1b_ref,
    w1_ref, fb1_ref, w2_ref, fb2_ref, ln2g_ref, ln2b_ref,
    o_ref, carry_ref, *, heads):
    """grid = (batch_blocks, num_layers); layer axis innermost ('arbitrary')."""
    layer = pl.program_id(1)

    @pl.when(layer == 0)
    def _():
        carry_ref[...] = x0_ref[...].astype(jnp.float32)

    x = carry_ref[...]                         # (Nb, L, E) f32 carried activation
    enc = enc_ref[...]                         # (Nb, Ls, E) bf16
    E = x.shape[-1]
    D = E // heads

    def mm(a, w):                              # (Nb, m, k) @ (k, n) -> f32
        return lax.dot_general(a.astype(_COMPUTE_DT), w.astype(_COMPUTE_DT),
                               _MM3_DIMS, preferred_element_type=jnp.float32)

    def layer_norm(s, g, b):
        mu = jnp.mean(s, axis=-1, keepdims=True)
        var = jnp.mean(jnp.square(s - mu), axis=-1, keepdims=True)
        return (s - mu) * lax.rsqrt(var + jnp.float32(_LN_EPS)) * g + b

    def mha(q_src, kv_src, wq, wk, wv, wo, bo, bias):
        # q_src (Nb, Lq, E) bf16; kv_src (Nb, Lk, E) bf16; bias bcast to (Nb, Lq, Lk) f32.
        # The 1/sqrt(E) scale is pre-folded into wq at prep time.
        Nb, Lq = q_src.shape[0], q_src.shape[1]
        out = jnp.zeros((Nb, Lq, E), jnp.float32) + bo            # fc_out bias
        # TODO(synk): for long sequences, tile the KV axis with online softmax
        # (flash-style) instead of materializing full (Lq, Lk) logits per head.
        for h in range(heads):                                    # heads small & static
            sl = slice(h * D, (h + 1) * D)
            q = mm(q_src[:, :, sl], wq)                           # (Nb, Lq, D)
            k = mm(kv_src[:, :, sl], wk)
            v = mm(kv_src[:, :, sl], wv)
            logits = lax.dot_general(
                q.astype(_COMPUTE_DT), k.astype(_COMPUTE_DT), _BQK_DIMS,
                preferred_element_type=jnp.float32) + bias
            m = jnp.max(logits, axis=-1, keepdims=True)
            p = jnp.exp(logits - m)
            attn = p * pl.reciprocal(jnp.sum(p, axis=-1, keepdims=True), approx=True)
            head_out = lax.dot_general(
                attn.astype(_COMPUTE_DT), v.astype(_COMPUTE_DT), _BPV_DIMS,
                preferred_element_type=jnp.float32)               # (Nb, Lq, D)
            # concat(heads) @ Wo^T == sum_h head_out_h @ Wo^T[h*D:(h+1)*D, :]
            out = out + mm(head_out, wo[sl, :])
        return out

    xb = x.astype(_COMPUTE_DT)

    # --- masked self attention + add & norm (DecoderBlock) -------------------
    a1 = mha(xb, xb, wq1_ref[...], wk1_ref[...], wv1_ref[...], wo1_ref[...],
             bo1_ref[...], tb_ref[...])
    query = layer_norm(a1 + x, ln0g_ref[...], ln0b_ref[...])

    # --- cross attention + add & norm (TransformerBlock.norm1) ---------------
    qb = query.astype(_COMPUTE_DT)
    a2 = mha(qb, enc, wq2_ref[...], wk2_ref[...], wv2_ref[...], wo2_ref[...],
             bo2_ref[...], sb_ref[...])
    x2 = layer_norm(a2 + query, ln1g_ref[...], ln1b_ref[...])

    # --- feed forward + add & norm (TransformerBlock.norm2) ------------------
    hmid = jnp.maximum(mm(x2, w1_ref[...]) + fb1_ref[...], jnp.float32(0.0))
    ff = mm(hmid, w2_ref[...]) + fb2_ref[...]
    out = layer_norm(ff + x2, ln2g_ref[...], ln2b_ref[...])

    carry_ref[...] = out

    @pl.when(layer == pl.num_programs(1) - 1)
    def _():
        o_ref[...] = out.astype(o_ref.dtype)


def decoder_stack(x0, enc, tgt_bias, src_bias, stacked, *, heads, batch_block=None):
    """Run all decoder layers in a single pallas_call."""
    N, L, E = x0.shape
    num_layers = stacked['wq1'].shape[0]

    # Choose the batch block: keep >= 2 parallel grid blocks when possible so the
    # two v7x TensorCores both get work, while still making grid steps bigger.
    if batch_block is None:
        Nb = N // 2 if (N >= 2 and N % 2 == 0) else N
    else:
        Nb = batch_block
    if N % Nb != 0:
        Nb = 1

    def per_batch(shape):
        nd = len(shape)
        return pl.BlockSpec((Nb,) + tuple(shape[1:]),
                            lambda n, l: (n,) + (0,) * (nd - 1))

    def per_layer(arr):
        nd = arr.ndim
        return pl.BlockSpec((None,) + tuple(arr.shape[1:]),
                            lambda n, l: (l,) + (0,) * (nd - 1))

    weights = [stacked[k] for k in _LAYER_WEIGHT_KEYS]
    in_specs = ([per_batch(x0.shape), per_batch(enc.shape),
                 per_batch(tgt_bias.shape), per_batch(src_bias.shape)]
                + [per_layer(w) for w in weights])

    return pl.pallas_call(
        functools.partial(_decoder_stack_kernel, heads=heads),
        grid=(N // Nb, num_layers),
        in_specs=in_specs,
        out_specs=pl.BlockSpec((Nb, L, E), lambda n, l: (n, 0, 0)),
        out_shape=jax.ShapeDtypeStruct((N, L, E), _COMPUTE_DT),
        scratch_shapes=[pltpu.VMEM((Nb, L, E), jnp.float32)],     # carried activation
        compiler_params=pltpu.CompilerParams(
            # batch blocks "parallel" (megacore on v7x); layer axis is carried.
            dimension_semantics=("parallel", "arbitrary"),
            # TODO(synk): at production sizes budget VMEM per generation
            # (<= ~56 MiB on v7x, up to ~100 MiB on v5e/v6e).
            vmem_limit_bytes=32 * 1024 * 1024),
    )(x0, enc, tgt_bias, src_bias, *weights)


# ----------------------------------------------------------------------------
# Final vocab projection: rows AND padded vocab axis tiled, weights streamed
# ----------------------------------------------------------------------------

def _output_proj_kernel(x_ref, w_ref, b_ref, o_ref):
    y = lax.dot_general(x_ref[...], w_ref[...], _MM2_DIMS,
                        preferred_element_type=jnp.float32)
    o_ref[...] = (y + b_ref[...]).astype(o_ref.dtype)


def output_projection(x2d, w_t_pad, b_pad, *, row_tile=256, col_tile=512):
    """y = x @ W_pad + b_pad with W_pad pre-padded to a 128-multiple vocab axis."""
    M, E = x2d.shape
    Vp = w_t_pad.shape[1]

    tm = min(row_tile, ((M + 7) // 8) * 8)
    Mp = pl.cdiv(M, tm) * tm
    xp = x2d if Mp == M else jnp.pad(x2d, ((0, Mp - M), (0, 0)))
    tn = math.gcd(col_tile, Vp)                 # multiple of 128 that divides Vp

    out = pl.pallas_call(
        _output_proj_kernel,
        grid=(Mp // tm, Vp // tn),
        in_specs=[pl.BlockSpec((tm, E), lambda i, j: (i, 0)),     # reused across vocab
                  pl.BlockSpec((E, tn), lambda i, j: (0, j)),     # streamed weights
                  pl.BlockSpec((1, tn), lambda i, j: (0, j))],
        out_specs=pl.BlockSpec((tm, tn), lambda i, j: (i, j)),    # lane-dense stores
        out_shape=jax.ShapeDtypeStruct((Mp, Vp), jnp.float32),
        compiler_params=pltpu.CompilerParams(
            dimension_semantics=("parallel", "parallel"),
            vmem_limit_bytes=32 * 1024 * 1024),
    )(xp, w_t_pad, b_pad)
    return out[:M]


# ----------------------------------------------------------------------------
# Parameter construction (PyTorch layout) + one-time kernel-layout preparation
# ----------------------------------------------------------------------------

def init_params(key, vocab, embed, num_layers, heads, fwd_exp, max_len):
    D = embed // heads
    F = fwd_exp * embed

    def nrm(k, shape, s=0.02):
        return (s * jax.random.normal(k, shape)).astype(jnp.float32)

    keys = jax.random.split(key, 4 + num_layers)
    params = {
        'word_emb': nrm(keys[0], (vocab, embed), 1.0),
        'pos_emb': nrm(keys[1], (max_len, embed), 1.0),
        'Wout': nrm(keys[2], (vocab, embed)),
        'bout': jnp.zeros((vocab,), jnp.float32),
        'layers': [],
    }

    def attn_params(k):
        ks = jax.random.split(k, 4)
        return {'Wv': nrm(ks[0], (D, D)), 'Wk': nrm(ks[1], (D, D)),
                'Wq': nrm(ks[2], (D, D)), 'Wo': nrm(ks[3], (embed, embed)),
                'bo': jnp.zeros((embed,), jnp.float32)}

    for i in range(num_layers):
        lk = jax.random.split(keys[4 + i], 4)
        params['layers'].append({
            'self_attn': attn_params(lk[0]),
            'norm_g': jnp.ones((embed,), jnp.float32),
            'norm_b': jnp.zeros((embed,), jnp.float32),
            'cross_attn': attn_params(lk[1]),
            'norm1_g': jnp.ones((embed,), jnp.float32),
            'norm1_b': jnp.zeros((embed,), jnp.float32),
            'W1': nrm(lk[2], (F, embed)),
            'b1': jnp.zeros((F,), jnp.float32),
            'W2': nrm(lk[3], (embed, F)),
            'b2': jnp.zeros((embed,), jnp.float32),
            'norm2_g': jnp.ones((embed,), jnp.float32),
            'norm2_b': jnp.zeros((embed,), jnp.float32),
        })
    return params


def prepare_params(params, heads):
    """PyTorch-layout params -> kernel layout, done ONCE (hoisted out of forward):
    pre-transposed bf16 matmul weights, 1/sqrt(E) folded into Wq (PyTorch divides
    by sqrt(embed_size)), per-layer weights stacked along a leading layer axis,
    vocab projection padded to a lane-dense 128 multiple."""
    E = params['word_emb'].shape[1]
    inv_scale = 1.0 / float(E) ** 0.5
    layers = params['layers']

    def stack(fn):
        return jnp.stack([fn(l) for l in layers], axis=0)

    def row(v):
        return v.reshape(1, -1).astype(jnp.float32)

    stacked = {
        'wq1': stack(lambda l: (l['self_attn']['Wq'].T * inv_scale).astype(_COMPUTE_DT)),
        'wk1': stack(lambda l: l['self_attn']['Wk'].T.astype(_COMPUTE_DT)),
        'wv1': stack(lambda l: l['self_attn']['Wv'].T.astype(_COMPUTE_DT)),
        'wo1': stack(lambda l: l['self_attn']['Wo'].T.astype(_COMPUTE_DT)),
        'bo1': stack(lambda l: row(l['self_attn']['bo'])),
        'ln0g': stack(lambda l: row(l['norm_g'])),
        'ln0b': stack(lambda l: row(l['norm_b'])),
        'wq2': stack(lambda l: (l['cross_attn']['Wq'].T * inv_scale).astype(_COMPUTE_DT)),
        'wk2': stack(lambda l: l['cross_attn']['Wk'].T.astype(_COMPUTE_DT)),
        'wv2': stack(lambda l: l['cross_attn']['Wv'].T.astype(_COMPUTE_DT)),
        'wo2': stack(lambda l: l['cross_attn']['Wo'].T.astype(_COMPUTE_DT)),
        'bo2': stack(lambda l: row(l['cross_attn']['bo'])),
        'ln1g': stack(lambda l: row(l['norm1_g'])),
        'ln1b': stack(lambda l: row(l['norm1_b'])),
        'w1': stack(lambda l: l['W1'].T.astype(_COMPUTE_DT)),
        'fb1': stack(lambda l: row(l['b1'])),
        'w2': stack(lambda l: l['W2'].T.astype(_COMPUTE_DT)),
        'fb2': stack(lambda l: row(l['b2'])),
        'ln2g': stack(lambda l: row(l['norm2_g'])),
        'ln2b': stack(lambda l: row(l['norm2_b'])),
    }

    V = params['Wout'].shape[0]
    Vp = pl.cdiv(V, 128) * 128
    w_t_pad = jnp.zeros((E, Vp), _COMPUTE_DT).at[:, :V].set(
        params['Wout'].T.astype(_COMPUTE_DT))
    b_pad = jnp.zeros((1, Vp), jnp.float32).at[:, :V].set(params['bout'])

    return {'word_emb': params['word_emb'], 'pos_emb': params['pos_emb'],
            'layers_stacked': stacked, 'wout_t_pad': w_t_pad, 'bout_pad': b_pad}


# ----------------------------------------------------------------------------
# Decoder forward (glue in JAX, compute in the fused Pallas kernels)
# ----------------------------------------------------------------------------

def decoder_forward(prepared, tokens, enc_out, src_mask, tgt_mask, *, heads, vocab):
    N, L = tokens.shape
    E = prepared['word_emb'].shape[1]

    # Embedding gathers kept as plain JAX glue; dropout = identity (eval mode).
    positions = jnp.arange(L)
    h = (prepared['word_emb'][tokens]
         + prepared['pos_emb'][positions][None, :, :]).astype(_COMPUTE_DT)
    enc = enc_out.astype(_COMPUTE_DT)

    # Additive f32 attention biases, built ONCE per forward (no per-layer/head
    # (N*heads, L, Lk) int mask broadcast in HBM).
    tgt_bias = jnp.where(tgt_mask[:, 0] == 0, _NEG_INF, 0.0).astype(jnp.float32)
    src_bias = jnp.where(src_mask[:, 0] == 0, _NEG_INF, 0.0).astype(jnp.float32)

    h = decoder_stack(h, enc, tgt_bias, src_bias, prepared['layers_stacked'],
                      heads=heads)
    logits = output_projection(h.reshape(N * L, E),
                               prepared['wout_t_pad'], prepared['bout_pad'])
    return logits[:, :vocab].reshape(N, L, vocab)


# ----------------------------------------------------------------------------
# Main
# ----------------------------------------------------------------------------

if __name__ == "__main__":
    N = 2            # batch
    L = 8            # target sequence length
    L_src = 10       # encoder sequence length
    vocab = 50
    embed = 32
    heads = 4
    num_layers = 2
    fwd_exp = 2
    max_len = 16

    key = jax.random.PRNGKey(0)
    k_param, k_tok, k_enc = jax.random.split(key, 3)

    params = init_params(k_param, vocab, embed, num_layers, heads, fwd_exp, max_len)
    prepared = prepare_params(params, heads)   # weight prep hoisted out of forward

    tokens = jax.random.randint(k_tok, (N, L), 0, vocab, dtype=jnp.int32)
    enc_out = jax.random.normal(k_enc, (N, L_src, embed), dtype=jnp.float32)

    # typical masks: causal tgt mask (N,1,L,L), all-ones src mask (N,1,1,L_src)
    tgt_mask = jnp.tril(jnp.ones((L, L), jnp.int32))[None, None, :, :].repeat(N, 0)
    src_mask = jnp.ones((N, 1, 1, L_src), jnp.int32)

    fwd = jax.jit(functools.partial(decoder_forward, heads=heads, vocab=vocab))
    out = jax.block_until_ready(fwd(prepared, tokens, enc_out, src_mask, tgt_mask))

    assert out.shape == (N, L, vocab), out.shape
    assert jnp.all(jnp.isfinite(out))
    print("KERNEL_OK")
</pallas_src>

<mosaic_0001>
module attributes {stable_mosaic.version = 11 : i64} {
  func.func @_output_proj_kernel(%arg0: i32, %arg1: i32, %arg2: memref<16x32xbf16, #tpu.memory_space<vmem>>, %arg3: memref<32x128xbf16, #tpu.memory_space<vmem>>, %arg4: memref<1x128xf32, #tpu.memory_space<vmem>>, %arg5: memref<16x128xf32, #tpu.memory_space<vmem>>) attributes {dimension_semantics = [#tpu.dimension_semantics<parallel>, #tpu.dimension_semantics<parallel>], iteration_bounds = array<i64: 1, 1>, scalar_prefetch = 0 : i64, scratch_operands = 0 : i64, tpu.core_type = #tpu.core_type<tc>, window_params = [{transform_indices = @transform_0, window_bounds = array<i64: 16, 32>}, {transform_indices = @transform_1, window_bounds = array<i64: 32, 128>}, {transform_indices = @transform_2, window_bounds = array<i64: 1, 128>}, {transform_indices = @transform_3, window_bounds = array<i64: 16, 128>}]} {
    %c0 = arith.constant 0 : index
    %c0_0 = arith.constant 0 : index
    %0 = vector.load %arg2[%c0, %c0_0] : memref<16x32xbf16, #tpu.memory_space<vmem>>, vector<16x32xbf16>
    %c0_1 = arith.constant 0 : index
    %c0_2 = arith.constant 0 : index
    %1 = vector.load %arg3[%c0_1, %c0_2] : memref<32x128xbf16, #tpu.memory_space<vmem>>, vector<32x128xbf16>
    %cst = arith.constant dense<0.000000e+00> : vector<16x128xf32>
    %2 = tpu.matmul %0, %1, %cst {dimension_numbers = #tpu.dot_dimension_numbers<[1], [0], [0], [1], [0, 0, 1, 1], [], []>} : vector<16x32xbf16>, vector<32x128xbf16>, vector<16x128xf32> -> vector<16x128xf32>
    %c0_3 = arith.constant 0 : index
    %c0_4 = arith.constant 0 : index
    %3 = vector.load %arg4[%c0_3, %c0_4] : memref<1x128xf32, #tpu.memory_space<vmem>>, vector<1x128xf32>
    %4 = vector.broadcast %3 : vector<1x128xf32> to vector<16x128xf32>
    %5 = arith.addf %2, %4 : vector<16x128xf32>
    %c0_5 = arith.constant 0 : index
    %c0_6 = arith.constant 0 : index
    %6 = vector.load %arg5[%c0_5, %c0_6] : memref<16x128xf32, #tpu.memory_space<vmem>>, vector<16x128xf32>
    tpu.vector_store %arg5[%c0_5, %c0_6], %5 {strides = array<i32>} : memref<16x128xf32, #tpu.memory_space<vmem>>, vector<16x128xf32>,
    return
  }
  func.func @transform_0(%arg0: i32, %arg1: i32) -> (i32, i32) {
    %c0_i32 = arith.constant 0 : i32
    %c0_i32_0 = arith.constant 0 : i32
    return %arg0, %c0_i32 : i32, i32
  }
  func.func @transform_1(%arg0: i32, %arg1: i32) -> (i32, i32) {
    %c0_i32 = arith.constant 0 : i32
    %c0_i32_0 = arith.constant 0 : i32
    return %c0_i32, %arg1 : i32, i32
  }
  func.func @transform_2(%arg0: i32, %arg1: i32) -> (i32, i32) {
    %c0_i32 = arith.constant 0 : i32
    %c0_i32_0 = arith.constant 0 : i32
    return %c0_i32, %arg1 : i32, i32
  }
  func.func @transform_3(%arg0: i32, %arg1: i32) -> (i32, i32) {
    %c0_i32 = arith.constant 0 : i32
    return %arg0, %arg1 : i32, i32
  }
}

module attributes {stable_mosaic.version = 11 : i64} {
  func.func @_decoder_stack_kernel(%arg0: i32, %arg1: i32, %arg2: memref<1x8x32xbf16, #tpu.memory_space<vmem>>, %arg3: memref<1x10x32xbf16, #tpu.memory_space<vmem>>, %arg4: memref<1x8x8xf32, #tpu.memory_space<vmem>>, %arg5: memref<1x1x10xf32, #tpu.memory_space<vmem>>, %arg6: memref<1x8x8xbf16, #tpu.memory_space<vmem>>, %arg7: memref<1x8x8xbf16, #tpu.memory_space<vmem>>, %arg8: memref<1x8x8xbf16, #tpu.memory_space<vmem>>, %arg9: memref<1x32x32xbf16, #tpu.memory_space<vmem>>, %arg10: memref<1x1x32xf32, #tpu.memory_space<vmem>>, %arg11: memref<1x1x32xf32, #tpu.memory_space<vmem>>, %arg12: memref<1x1x32xf32, #tpu.memory_space<vmem>>, %arg13: memref<1x8x8xbf16, #tpu.memory_space<vmem>>, %arg14: memref<1x8x8xbf16, #tpu.memory_space<vmem>>, %arg15: memref<1x8x8xbf16, #tpu.memory_space<vmem>>, %arg16: memref<1x32x32xbf16, #tpu.memory_space<vmem>>, %arg17: memref<1x1x32xf32, #tpu.memory_space<vmem>>, %arg18: memref<1x1x32xf32, #tpu.memory_space<vmem>>, %arg19: memref<1x1x32xf32, #tpu.memory_space<vmem>>, %arg20: memref<1x32x64xbf16, #tpu.memory_space<vmem>>, %arg21: memref<1x1x64xf32, #tpu.memory_space<vmem>>, %arg22: memref<1x64x32xbf16, #tpu.memory_space<vmem>>, %arg23: memref<1x1x32xf32, #tpu.memory_space<vmem>>, %arg24: memref<1x1x32xf32, #tpu.memory_space<vmem>>, %arg25: memref<1x1x32xf32, #tpu.memory_space<vmem>>, %arg26: memref<1x8x32xbf16, #tpu.memory_space<vmem>>, %arg27: memref<1x8x32xf32, #tpu.memory_space<vmem>>) attributes {dimension_semantics = [#tpu.dimension_semantics<parallel>, #tpu.dimension_semantics<arbitrary>], iteration_bounds = array<i64: 2, 2>, scalar_prefetch = 0 : i64, scratch_operands = 1 : i64, tpu.core_type = #tpu.core_type<tc>, window_params = [{transform_indices = @transform_0, window_bounds = array<i64: 1, 8, 32>}, {transform_indices = @transform_1, window_bounds = array<i64: 1, 10, 32>}, {transform_indices = @transform_2, window_bounds = array<i64: 1, 8, 8>}, {transform_indices = @transform_3, window_bounds = array<i64: 1, 1, 10>}, {transform_indices = @transform_4, window_bounds = array<i64: 1, 8, 8>}, {transform_indices = @transform_5, window_bounds = array<i64: 1, 8, 8>}, {transform_indices = @transform_6, window_bounds = array<i64: 1, 8, 8>}, {transform_indices = @transform_7, window_bounds = array<i64: 1, 32, 32>}, {transform_indices = @transform_8, window_bounds = array<i64: 1, 1, 32>}, {transform_indices = @transform_9, window_bounds = array<i64: 1, 1, 32>}, {transform_indices = @transform_10, window_bounds = array<i64: 1, 1, 32>}, {transform_indices = @transform_11, window_bounds = array<i64: 1, 8, 8>}, {transform_indices = @transform_12, window_bounds = array<i64: 1, 8, 8>}, {transform_indices = @transform_13, window_bounds = array<i64: 1, 8, 8>}, {transform_indices = @transform_14, window_bounds = array<i64: 1, 32, 32>}, {transform_indices = @transform_15, window_bounds = array<i64: 1, 1, 32>}, {transform_indices = @transform_16, window_bounds = array<i64: 1, 1, 32>}, {transform_indices = @transform_17, window_bounds = array<i64: 1, 1, 32>}, {transform_indices = @transform_18, window_bounds = array<i64: 1, 32, 64>}, {transform_indices = @transform_19, window_bounds = array<i64: 1, 1, 64>}, {transform_indices = @transform_20, window_bounds = array<i64: 1, 64, 32>}, {transform_indices = @transform_21, window_bounds = array<i64: 1, 1, 32>}, {transform_indices = @transform_22, window_bounds = array<i64: 1, 1, 32>}, {transform_indices = @transform_23, window_bounds = array<i64: 1, 1, 32>}, {transform_indices = @transform_24, window_bounds = array<i64: 1, 8, 32>}]} {
    %c0_i32 = arith.constant 0 : i32
    %0 = arith.cmpi eq, %arg1, %c0_i32 : i32
    %1 = arith.extui %0 : i1 to i32
    %c0_i32_0 = arith.constant 0 : i32
    %2 = arith.cmpi ne, %1, %c0_i32_0 : i32
    scf.if %2 {
      %c0_159 = arith.constant 0 : index
      %c0_160 = arith.constant 0 : index
      %c0_161 = arith.constant 0 : index
      %368 = vector.load %arg2[%c0_159, %c0_160, %c0_161] : memref<1x8x32xbf16, #tpu.memory_space<vmem>>, vector<1x8x32xbf16>
      %369 = arith.extf %368 : vector<1x8x32xbf16> to vector<1x8x32xf32>
      %c0_162 = arith.constant 0 : index
      %c0_163 = arith.constant 0 : index
      %c0_164 = arith.constant 0 : index
      %370 = vector.load %arg27[%c0_162, %c0_163, %c0_164] : memref<1x8x32xf32, #tpu.memory_space<vmem>>, vector<1x8x32xf32>
      tpu.vector_store %arg27[%c0_162, %c0_163, %c0_164], %369 {strides = array<i32>} : memref<1x8x32xf32, #tpu.memory_space<vmem>>, vector<1x8x32xf32>,
    } else {
    }
    %c0 = arith.constant 0 : index
    %c0_1 = arith.constant 0 : index
    %c0_2 = arith.constant 0 : index
    %3 = vector.load %arg27[%c0, %c0_1, %c0_2] : memref<1x8x32xf32, #tpu.memory_space<vmem>>, vector<1x8x32xf32>
    %c0_3 = arith.constant 0 : index
    %c0_4 = arith.constant 0 : index
    %c0_5 = arith.constant 0 : index
    %4 = vector.load %arg3[%c0_3, %c0_4, %c0_5] : memref<1x10x32xbf16, #tpu.memory_space<vmem>>, vector<1x10x32xbf16>
    %5 = arith.truncf %3 : vector<1x8x32xf32> to vector<1x8x32xbf16>
    %c0_6 = arith.constant 0 : index
    %c0_7 = arith.constant 0 : index
    %c0_8 = arith.constant 0 : index
    %6 = vector.load %arg6[%c0_6, %c0_7, %c0_8] : memref<1x8x8xbf16, #tpu.memory_space<vmem>>, vector<1x8x8xbf16>
    %7 = vector.shape_cast %6 : vector<1x8x8xbf16> to vector<8x8xbf16>
    %c0_9 = arith.constant 0 : index
    %c0_10 = arith.constant 0 : index
    %c0_11 = arith.constant 0 : index
    %8 = vector.load %arg7[%c0_9, %c0_10, %c0_11] : memref<1x8x8xbf16, #tpu.memory_space<vmem>>, vector<1x8x8xbf16>
    %9 = vector.shape_cast %8 : vector<1x8x8xbf16> to vector<8x8xbf16>
    %c0_12 = arith.constant 0 : index
    %c0_13 = arith.constant 0 : index
    %c0_14 = arith.constant 0 : index
    %10 = vector.load %arg8[%c0_12, %c0_13, %c0_14] : memref<1x8x8xbf16, #tpu.memory_space<vmem>>, vector<1x8x8xbf16>
    %11 = vector.shape_cast %10 : vector<1x8x8xbf16> to vector<8x8xbf16>
    %c0_15 = arith.constant 0 : index
    %c0_16 = arith.constant 0 : index
    %c0_17 = arith.constant 0 : index
    %12 = vector.load %arg9[%c0_15, %c0_16, %c0_17] : memref<1x32x32xbf16, #tpu.memory_space<vmem>>, vector<1x32x32xbf16>
    %13 = vector.shape_cast %12 : vector<1x32x32xbf16> to vector<32x32xbf16>
    %c0_18 = arith.constant 0 : index
    %c0_19 = arith.constant 0 : index
    %c0_20 = arith.constant 0 : index
    %14 = vector.load %arg10[%c0_18, %c0_19, %c0_20] : memref<1x1x32xf32, #tpu.memory_space<vmem>>, vector<1x1x32xf32>
    %15 = vector.shape_cast %14 : vector<1x1x32xf32> to vector<1x32xf32>
    %c0_21 = arith.constant 0 : index
    %c0_22 = arith.constant 0 : index
    %c0_23 = arith.constant 0 : index
    %16 = vector.load %arg4[%c0_21, %c0_22, %c0_23] : memref<1x8x8xf32, #tpu.memory_space<vmem>>, vector<1x8x8xf32>
    %cst = arith.constant 0.000000e+00 : f32
    %17 = vector.broadcast %cst : f32 to vector<1x8x32xf32>
    %18 = vector.shape_cast %15 : vector<1x32xf32> to vector<1x1x32xf32>
    %19 = vector.broadcast %18 : vector<1x1x32xf32> to vector<1x8x32xf32>
    %20 = arith.addf %17, %19 : vector<1x8x32xf32>
    %21 = vector.extract_strided_slice %5 {offsets = [0, 0, 0], sizes = [1, 8, 8], strides = [1, 1, 1]} : vector<1x8x32xbf16> to vector<1x8x8xbf16>
    %cst_24 = arith.constant dense<0.000000e+00> : vector<1x8x8xf32>
    %22 = tpu.matmul %21, %7, %cst_24 {dimension_numbers = #tpu.dot_dimension_numbers<[2], [0], [0, 1], [1], [0, 0, 0, 1, 1, 1], [], []>} : vector<1x8x8xbf16>, vector<8x8xbf16>, vector<1x8x8xf32> -> vector<1x8x8xf32>
    %23 = vector.extract_strided_slice %5 {offsets = [0, 0, 0], sizes = [1, 8, 8], strides = [1, 1, 1]} : vector<1x8x32xbf16> to vector<1x8x8xbf16>
    %cst_25 = arith.constant dense<0.000000e+00> : vector<1x8x8xf32>
    %24 = tpu.matmul %23, %9, %cst_25 {dimension_numbers = #tpu.dot_dimension_numbers<[2], [0], [0, 1], [1], [0, 0, 0, 1, 1, 1], [], []>} : vector<1x8x8xbf16>, vector<8x8xbf16>, vector<1x8x8xf32> -> vector<1x8x8xf32>
    %25 = vector.extract_strided_slice %5 {offsets = [0, 0, 0], sizes = [1, 8, 8], strides = [1, 1, 1]} : vector<1x8x32xbf16> to vector<1x8x8xbf16>
    %cst_26 = arith.constant dense<0.000000e+00> : vector<1x8x8xf32>
    %26 = tpu.matmul %25, %11, %cst_26 {dimension_numbers = #tpu.dot_dimension_numbers<[2], [0], [0, 1], [1], [0, 0, 0, 1, 1, 1], [], []>} : vector<1x8x8xbf16>, vector<8x8xbf16>, vector<1x8x8xf32> -> vector<1x8x8xf32>
    %27 = arith.truncf %22 : vector<1x8x8xf32> to vector<1x8x8xbf16>
    %28 = arith.truncf %24 : vector<1x8x8xf32> to vector<1x8x8xbf16>
    %cst_27 = arith.constant dense<0.000000e+00> : vector<1x8x8xf32>
    %29 = tpu.matmul %27, %28, %cst_27 {dimension_numbers = #tpu.dot_dimension_numbers<[2], [2], [1], [1], [0, 0, 0, 1, 1, 1], [0], [0]>} : vector<1x8x8xbf16>, vector<1x8x8xbf16>, vector<1x8x8xf32> -> vector<1x8x8xf32>
    %30 = arith.addf %29, %16 : vector<1x8x8xf32>
    %cst_28 = arith.constant dense<0xFF800000> : vector<1x8xf32>
    %31 = vector.multi_reduction <maximumf>, %30, %cst_28 [2] : vector<1x8x8xf32> to vector<1x8xf32>
    %32 = vector.shape_cast %31 : vector<1x8xf32> to vector<1x8x1xf32>
    %33 = vector.broadcast %32 : vector<1x8x1xf32> to vector<1x8x8xf32>
    %34 = arith.subf %30, %33 : vector<1x8x8xf32>
    %35 = math.exp %34 : vector<1x8x8xf32>
    %cst_29 = arith.constant dense<0.000000e+00> : vector<1x8xf32>
    %36 = vector.multi_reduction <add>, %35, %cst_29 [2] : vector<1x8x8xf32> to vector<1x8xf32>
    %37 = vector.shape_cast %36 : vector<1x8xf32> to vector<1x8x1xf32>
    %38 = tpu.reciprocal %37 {approx = true} : vector<1x8x1xf32> -> vector<1x8x1xf32>
    %39 = vector.broadcast %38 : vector<1x8x1xf32> to vector<1x8x8xf32>
    %40 = arith.mulf %35, %39 : vector<1x8x8xf32>
    %41 = arith.truncf %40 : vector<1x8x8xf32> to vector<1x8x8xbf16>
    %42 = arith.truncf %26 : vector<1x8x8xf32> to vector<1x8x8xbf16>
    %cst_30 = arith.constant dense<0.000000e+00> : vector<1x8x8xf32>
    %43 = tpu.matmul %41, %42, %cst_30 {dimension_numbers = #tpu.dot_dimension_numbers<[2], [1], [1], [2], [0, 0, 0, 1, 1, 2], [0], [0]>} : vector<1x8x8xbf16>, vector<1x8x8xbf16>, vector<1x8x8xf32> -> vector<1x8x8xf32>
    %44 = vector.extract_strided_slice %13 {offsets = [0, 0], sizes = [8, 32], strides = [1, 1]} : vector<32x32xbf16> to vector<8x32xbf16>
    %45 = arith.truncf %43 : vector<1x8x8xf32> to vector<1x8x8xbf16>
    %cst_31 = arith.constant dense<0.000000e+00> : vector<1x8x32xf32>
    %46 = tpu.matmul %45, %44, %cst_31 {dimension_numbers = #tpu.dot_dimension_numbers<[2], [0], [0, 1], [1], [0, 0, 0, 1, 1, 1], [], []>} : vector<1x8x8xbf16>, vector<8x32xbf16>, vector<1x8x32xf32> -> vector<1x8x32xf32>
    %47 = arith.addf %20, %46 : vector<1x8x32xf32>
    %48 = vector.extract_strided_slice %5 {offsets = [0, 0, 8], sizes = [1, 8, 8], strides = [1, 1, 1]} : vector<1x8x32xbf16> to vector<1x8x8xbf16>
    %cst_32 = arith.constant dense<0.000000e+00> : vector<1x8x8xf32>
    %49 = tpu.matmul %48, %7, %cst_32 {dimension_numbers = #tpu.dot_dimension_numbers<[2], [0], [0, 1], [1], [0, 0, 0, 1, 1, 1], [], []>} : vector<1x8x8xbf16>, vector<8x8xbf16>, vector<1x8x8xf32> -> vector<1x8x8xf32>
    %50 = vector.extract_strided_slice %5 {offsets = [0, 0, 8], sizes = [1, 8, 8], strides = [1, 1, 1]} : vector<1x8x32xbf16> to vector<1x8x8xbf16>
    %cst_33 = arith.constant dense<0.000000e+00> : vector<1x8x8xf32>
    %51 = tpu.matmul %50, %9, %cst_33 {dimension_numbers = #tpu.dot_dimension_numbers<[2], [0], [0, 1], [1], [0, 0, 0, 1, 1, 1], [], []>} : vector<1x8x8xbf16>, vector<8x8xbf16>, vector<1x8x8xf32> -> vector<1x8x8xf32>
    %52 = vector.extract_strided_slice %5 {offsets = [0, 0, 8], sizes = [1, 8, 8], strides = [1, 1, 1]} : vector<1x8x32xbf16> to vector<1x8x8xbf16>
    %cst_34 = arith.constant dense<0.000000e+00> : vector<1x8x8xf32>
    %53 = tpu.matmul %52, %11, %cst_34 {dimension_numbers = #tpu.dot_dimension_numbers<[2], [0], [0, 1], [1], [0, 0, 0, 1, 1, 1], [], []>} : vector<1x8x8xbf16>, vector<8x8xbf16>, vector<1x8x8xf32> -> vector<1x8x8xf32>
    %54 = arith.truncf %49 : vector<1x8x8xf32> to vector<1x8x8xbf16>
    %55 = arith.truncf %51 : vector<1x8x8xf32> to vector<1x8x8xbf16>
    %cst_35 = arith.constant dense<0.000000e+00> : vector<1x8x8xf32>
    %56 = tpu.matmul %54, %55, %cst_35 {dimension_numbers = #tpu.dot_dimension_numbers<[2], [2], [1], [1], [0, 0, 0, 1, 1, 1], [0], [0]>} : vector<1x8x8xbf16>, vector<1x8x8xbf16>, vector<1x8x8xf32> -> vector<1x8x8xf32>
    %57 = arith.addf %56, %16 : vector<1x8x8xf32>
    %cst_36 = arith.constant dense<0xFF800000> : vector<1x8xf32>
    %58 = vector.multi_reduction <maximumf>, %57, %cst_36 [2] : vector<1x8x8xf32> to vector<1x8xf32>
    %59 = vector.shape_cast %58 : vector<1x8xf32> to vector<1x8x1xf32>
    %60 = vector.broadcast %59 : vector<1x8x1xf32> to vector<1x8x8xf32>
    %61 = arith.subf %57, %60 : vector<1x8x8xf32>
    %62 = math.exp %61 : vector<1x8x8xf32>
    %cst_37 = arith.constant dense<0.000000e+00> : vector<1x8xf32>
    %63 = vector.multi_reduction <add>, %62, %cst_37 [2] : vector<1x8x8xf32> to vector<1x8xf32>
    %64 = vector.shape_cast %63 : vector<1x8xf32> to vector<1x8x1xf32>
    %65 = tpu.reciprocal %64 {approx = true} : vector<1x8x1xf32> -> vector<1x8x1xf32>
    %66 = vector.broadcast %65 : vector<1x8x1xf32> to vector<1x8x8xf32>
    %67 = arith.mulf %62, %66 : vector<1x8x8xf32>
    %68 = arith.truncf %67 : vector<1x8x8xf32> to vector<1x8x8xbf16>
    %69 = arith.truncf %53 : vector<1x8x8xf32> to vector<1x8x8xbf16>
    %cst_38 = arith.constant dense<0.000000e+00> : vector<1x8x8xf32>
    %70 = tpu.matmul %68, %69, %cst_38 {dimension_numbers = #tpu.dot_dimension_numbers<[2], [1], [1], [2], [0, 0, 0, 1, 1, 2], [0], [0]>} : vector<1x8x8xbf16>, vector<1x8x8xbf16>, vector<1x8x8xf32> -> vector<1x8x8xf32>
    %71 = vector.extract_strided_slice %13 {offsets = [8, 0], sizes = [8, 32], strides = [1, 1]} : vector<32x32xbf16> to vector<8x32xbf16>
    %72 = arith.truncf %70 : vector<1x8x8xf32> to vector<1x8x8xbf16>
    %cst_39 = arith.constant dense<0.000000e+00> : vector<1x8x32xf32>
    %73 = tpu.matmul %72, %71, %cst_39 {dimension_numbers = #tpu.dot_dimension_numbers<[2], [0], [0, 1], [1], [0, 0, 0, 1, 1, 1], [], []>} : vector<1x8x8xbf16>, vector<8x32xbf16>, vector<1x8x32xf32> -> vector<1x8x32xf32>
    %74 = arith.addf %47, %73 : vector<1x8x32xf32>
    %75 = vector.extract_strided_slice %5 {offsets = [0, 0, 16], sizes = [1, 8, 8], strides = [1, 1, 1]} : vector<1x8x32xbf16> to vector<1x8x8xbf16>
    %cst_40 = arith.constant dense<0.000000e+00> : vector<1x8x8xf32>
    %76 = tpu.matmul %75, %7, %cst_40 {dimension_numbers = #tpu.dot_dimension_numbers<[2], [0], [0, 1], [1], [0, 0, 0, 1, 1, 1], [], []>} : vector<1x8x8xbf16>, vector<8x8xbf16>, vector<1x8x8xf32> -> vector<1x8x8xf32>
    %77 = vector.extract_strided_slice %5 {offsets = [0, 0, 16], sizes = [1, 8, 8], strides = [1, 1, 1]} : vector<1x8x32xbf16> to vector<1x8x8xbf16>
    %cst_41 = arith.constant dense<0.000000e+00> : vector<1x8x8xf32>
    %78 = tpu.matmul %77, %9, %cst_41 {dimension_numbers = #tpu.dot_dimension_numbers<[2], [0], [0, 1], [1], [0, 0, 0, 1, 1, 1], [], []>} : vector<1x8x8xbf16>, vector<8x8xbf16>, vector<1x8x8xf32> -> vector<1x8x8xf32>
    %79 = vector.extract_strided_slice %5 {offsets = [0, 0, 16], sizes = [1, 8, 8], strides = [1, 1, 1]} : vector<1x8x32xbf16> to vector<1x8x8xbf16>
    %cst_42 = arith.constant dense<0.000000e+00> : vector<1x8x8xf32>
    %80 = tpu.matmul %79, %11, %cst_42 {dimension_numbers = #tpu.dot_dimension_numbers<[2], [0], [0, 1], [1], [0, 0, 0, 1, 1, 1], [], []>} : vector<1x8x8xbf16>, vector<8x8xbf16>, vector<1x8x8xf32> -> vector<1x8x8xf32>
    %81 = arith.truncf %76 : vector<1x8x8xf32> to vector<1x8x8xbf16>
    %82 = arith.truncf %78 : vector<1x8x8xf32> to vector<1x8x8xbf16>
    %cst_43 = arith.constant dense<0.000000e+00> : vector<1x8x8xf32>
    %83 = tpu.matmul %81, %82, %cst_43 {dimension_numbers = #tpu.dot_dimension_numbers<[2], [2], [1], [1], [0, 0, 0, 1, 1, 1], [0], [0]>} : vector<1x8x8xbf16>, vector<1x8x8xbf16>, vector<1x8x8xf32> -> vector<1x8x8xf32>
    %84 = arith.addf %83, %16 : vector<1x8x8xf32>
    %cst_44 = arith.constant dense<0xFF800000> : vector<1x8xf32>
    %85 = vector.multi_reduction <maximumf>, %84, %cst_44 [2] : vector<1x8x8xf32> to vector<1x8xf32>
    %86 = vector.shape_cast %85 : vector<1x8xf32> to vector<1x8x1xf32>
    %87 = vector.broadcast %86 : vector<1x8x1xf32> to vector<1x8x8xf32>
    %88 = arith.subf %84, %87 : vector<1x8x8xf32>
    %89 = math.exp %88 : vector<1x8x8xf32>
    %cst_45 = arith.constant dense<0.000000e+00> : vector<1x8xf32>
    %90 = vector.multi_reduction <add>, %89, %cst_45 [2] : vector<1x8x8xf32> to vector<1x8xf32>
    %91 = vector.shape_cast %90 : vector<1x8xf32> to vector<1x8x1xf32>
    %92 = tpu.reciprocal %91 {approx = true} : vector<1x8x1xf32> -> vector<1x8x1xf32>
    %93 = vector.broadcast %92 : vector<1x8x1xf32> to vector<1x8x8xf32>
    %94 = arith.mulf %89, %93 : vector<1x8x8xf32>
    %95 = arith.truncf %94 : vector<1x8x8xf32> to vector<1x8x8xbf16>
    %96 = arith.truncf %80 : vector<1x8x8xf32> to vector<1x8x8xbf16>
    %cst_46 = arith.constant dense<0.000000e+00> : vector<1x8x8xf32>
    %97 = tpu.matmul %95, %96, %cst_46 {dimension_numbers = #tpu.dot_dimension_numbers<[2], [1], [1], [2], [0, 0, 0, 1, 1, 2], [0], [0]>} : vector<1x8x8xbf16>, vector<1x8x8xbf16>, vector<1x8x8xf32> -> vector<1x8x8xf32>
    %98 = vector.extract_strided_slice %13 {offsets = [16, 0], sizes = [8, 32], strides = [1, 1]} : vector<32x32xbf16> to vector<8x32xbf16>
    %99 = arith.truncf %97 : vector<1x8x8xf32> to vector<1x8x8xbf16>
    %cst_47 = arith.constant dense<0.000000e+00> : vector<1x8x32xf32>
    %100 = tpu.matmul %99, %98, %cst_47 {dimension_numbers = #tpu.dot_dimension_numbers<[2], [0], [0, 1], [1], [0, 0, 0, 1, 1, 1], [], []>} : vector<1x8x8xbf16>, vector<8x32xbf16>, vector<1x8x32xf32> -> vector<1x8x32xf32>
    %101 = arith.addf %74, %100 : vector<1x8x32xf32>
    %102 = vector.extract_strided_slice %5 {offsets = [0, 0, 24], sizes = [1, 8, 8], strides = [1, 1, 1]} : vector<1x8x32xbf16> to vector<1x8x8xbf16>
    %cst_48 = arith.constant dense<0.000000e+00> : vector<1x8x8xf32>
    %103 = tpu.matmul %102, %7, %cst_48 {dimension_numbers = #tpu.dot_dimension_numbers<[2], [0], [0, 1], [1], [0, 0, 0, 1, 1, 1], [], []>} : vector<1x8x8xbf16>, vector<8x8xbf16>, vector<1x8x8xf32> -> vector<1x8x8xf32>
    %104 = vector.extract_strided_slice %5 {offsets = [0, 0, 24], sizes = [1, 8, 8], strides = [1, 1, 1]} : vector<1x8x32xbf16> to vector<1x8x8xbf16>
    %cst_49 = arith.constant dense<0.000000e+00> : vector<1x8x8xf32>
    %105 = tpu.matmul %104, %9, %cst_49 {dimension_numbers = #tpu.dot_dimension_numbers<[2], [0], [0, 1], [1], [0, 0, 0, 1, 1, 1], [], []>} : vector<1x8x8xbf16>, vector<8x8xbf16>, vector<1x8x8xf32> -> vector<1x8x8xf32>
    %106 = vector.extract_strided_slice %5 {offsets = [0, 0, 24], sizes = [1, 8, 8], strides = [1, 1, 1]} : vector<1x8x32xbf16> to vector<1x8x8xbf16>
    %cst_50 = arith.constant dense<0.000000e+00> : vector<1x8x8xf32>
    %107 = tpu.matmul %106, %11, %cst_50 {dimension_numbers = #tpu.dot_dimension_numbers<[2], [0], [0, 1], [1], [0, 0, 0, 1, 1, 1], [], []>} : vector<1x8x8xbf16>, vector<8x8xbf16>, vector<1x8x8xf32> -> vector<1x8x8xf32>
    %108 = arith.truncf %103 : vector<1x8x8xf32> to vector<1x8x8xbf16>
    %109 = arith.truncf %105 : vector<1x8x8xf32> to vector<1x8x8xbf16>
    %cst_51 = arith.constant dense<0.000000e+00> : vector<1x8x8xf32>
    %110 = tpu.matmul %108, %109, %cst_51 {dimension_numbers = #tpu.dot_dimension_numbers<[2], [2], [1], [1], [0, 0, 0, 1, 1, 1], [0], [0]>} : vector<1x8x8xbf16>, vector<1x8x8xbf16>, vector<1x8x8xf32> -> vector<1x8x8xf32>
    %111 = arith.addf %110, %16 : vector<1x8x8xf32>
    %cst_52 = arith.constant dense<0xFF800000> : vector<1x8xf32>
    %112 = vector.multi_reduction <maximumf>, %111, %cst_52 [2] : vector<1x8x8xf32> to vector<1x8xf32>
    %113 = vector.shape_cast %112 : vector<1x8xf32> to vector<1x8x1xf32>
    %114 = vector.broadcast %113 : vector<1x8x1xf32> to vector<1x8x8xf32>
    %115 = arith.subf %111, %114 : vector<1x8x8xf32>
    %116 = math.exp %115 : vector<1x8x8xf32>
    %cst_53 = arith.constant dense<0.000000e+00> : vector<1x8xf32>
    %117 = vector.multi_reduction <add>, %116, %cst_53 [2] : vector<1x8x8xf32> to vector<1x8xf32>
    %118 = vector.shape_cast %117 : vector<1x8xf32> to vector<1x8x1xf32>
    %119 = tpu.reciprocal %118 {approx = true} : vector<1x8x1xf32> -> vector<1x8x1xf32>
    %120 = vector.broadcast %119 : vector<1x8x1xf32> to vector<1x8x8xf32>
    %121 = arith.mulf %116, %120 : vector<1x8x8xf32>
    %122 = arith.truncf %121 : vector<1x8x8xf32> to vector<1x8x8xbf16>
    %123 = arith.truncf %107 : vector<1x8x8xf32> to vector<1x8x8xbf16>
    %cst_54 = arith.constant dense<0.000000e+00> : vector<1x8x8xf32>
    %124 = tpu.matmul %122, %123, %cst_54 {dimension_numbers = #tpu.dot_dimension_numbers<[2], [1], [1], [2], [0, 0, 0, 1, 1, 2], [0], [0]>} : vector<1x8x8xbf16>, vector<1x8x8xbf16>, vector<1x8x8xf32> -> vector<1x8x8xf32>
    %125 = vector.extract_strided_slice %13 {offsets = [24, 0], sizes = [8, 32], strides = [1, 1]} : vector<32x32xbf16> to vector<8x32xbf16>
    %126 = arith.truncf %124 : vector<1x8x8xf32> to vector<1x8x8xbf16>
    %cst_55 = arith.constant dense<0.000000e+00> : vector<1x8x32xf32>
    %127 = tpu.matmul %126, %125, %cst_55 {dimension_numbers = #tpu.dot_dimension_numbers<[2], [0], [0, 1], [1], [0, 0, 0, 1, 1, 1], [], []>} : vector<1x8x8xbf16>, vector<8x32xbf16>, vector<1x8x32xf32> -> vector<1x8x32xf32>
    %128 = arith.addf %101, %127 : vector<1x8x32xf32>
    %129 = arith.addf %128, %3 : vector<1x8x32xf32>
    %c0_56 = arith.constant 0 : index
    %c0_57 = arith.constant 0 : index
    %c0_58 = arith.constant 0 : index
    %130 = vector.load %arg11[%c0_56, %c0_57, %c0_58] : memref<1x1x32xf32, #tpu.memory_space<vmem>>, vector<1x1x32xf32>
    %131 = vector.shape_cast %130 : vector<1x1x32xf32> to vector<1x32xf32>
    %c0_59 = arith.constant 0 : index
    %c0_60 = arith.constant 0 : index
    %c0_61 = arith.constant 0 : index
    %132 = vector.load %arg12[%c0_59, %c0_60, %c0_61] : memref<1x1x32xf32, #tpu.memory_space<vmem>>, vector<1x1x32xf32>
    %133 = vector.shape_cast %132 : vector<1x1x32xf32> to vector<1x32xf32>
    %cst_62 = arith.constant dense<0.000000e+00> : vector<1x8xf32>
    %134 = vector.multi_reduction <add>, %129, %cst_62 [2] : vector<1x8x32xf32> to vector<1x8xf32>
    %135 = vector.shape_cast %134 : vector<1x8xf32> to vector<1x8x1xf32>
    %cst_63 = arith.constant 3.200000e+01 : f32
    %136 = vector.broadcast %cst_63 : f32 to vector<1x8x1xf32>
    %137 = arith.divf %135, %136 : vector<1x8x1xf32>
    %138 = vector.broadcast %137 : vector<1x8x1xf32> to vector<1x8x32xf32>
    %139 = arith.subf %129, %138 : vector<1x8x32xf32>
    %140 = arith.mulf %139, %139 : vector<1x8x32xf32>
    %cst_64 = arith.constant dense<0.000000e+00> : vector<1x8xf32>
    %141 = vector.multi_reduction <add>, %140, %cst_64 [2] : vector<1x8x32xf32> to vector<1x8xf32>
    %142 = vector.shape_cast %141 : vector<1x8xf32> to vector<1x8x1xf32>
    %cst_65 = arith.constant 3.200000e+01 : f32
    %143 = vector.broadcast %cst_65 : f32 to vector<1x8x1xf32>
    %144 = arith.divf %142, %143 : vector<1x8x1xf32>
    %145 = vector.broadcast %137 : vector<1x8x1xf32> to vector<1x8x32xf32>
    %146 = arith.subf %129, %145 : vector<1x8x32xf32>
    %cst_66 = arith.constant 9.99999974E-6 : f32
    %147 = vector.broadcast %cst_66 : f32 to vector<1x8x1xf32>
    %148 = arith.addf %144, %147 : vector<1x8x1xf32>
    %149 = math.rsqrt %148 : vector<1x8x1xf32>
    %150 = vector.broadcast %149 : vector<1x8x1xf32> to vector<1x8x32xf32>
    %151 = arith.mulf %146, %150 : vector<1x8x32xf32>
    %152 = vector.shape_cast %131 : vector<1x32xf32> to vector<1x1x32xf32>
    %153 = vector.broadcast %152 : vector<1x1x32xf32> to vector<1x8x32xf32>
    %154 = arith.mulf %151, %153 : vector<1x8x32xf32>
    %155 = vector.shape_cast %133 : vector<1x32xf32> to vector<1x1x32xf32>
    %156 = vector.broadcast %155 : vector<1x1x32xf32> to vector<1x8x32xf32>
    %157 = arith.addf %154, %156 : vector<1x8x32xf32>
    %158 = arith.truncf %157 : vector<1x8x32xf32> to vector<1x8x32xbf16>
    %c0_67 = arith.constant 0 : index
    %c0_68 = arith.constant 0 : index
    %c0_69 = arith.constant 0 : index
    %159 = vector.load %arg13[%c0_67, %c0_68, %c0_69] : memref<1x8x8xbf16, #tpu.memory_space<vmem>>, vector<1x8x8xbf16>
    %160 = vector.shape_cast %159 : vector<1x8x8xbf16> to vector<8x8xbf16>
    %c0_70 = arith.constant 0 : index
    %c0_71 = arith.constant 0 : index
    %c0_72 = arith.constant 0 : index
    %161 = vector.load %arg14[%c0_70, %c0_71, %c0_72] : memref<1x8x8xbf16, #tpu.memory_space<vmem>>, vector<1x8x8xbf16>
    %162 = vector.shape_cast %161 : vector<1x8x8xbf16> to vector<8x8xbf16>
    %c0_73 = arith.constant 0 : index
    %c0_74 = arith.constant 0 : index
    %c0_75 = arith.constant 0 : index
    %163 = vector.load %arg15[%c0_73, %c0_74, %c0_75] : memref<1x8x8xbf16, #tpu.memory_space<vmem>>, vector<1x8x8xbf16>
    %164 = vector.shape_cast %163 : vector<1x8x8xbf16> to vector<8x8xbf16>
    %c0_76 = arith.constant 0 : index
    %c0_77 = arith.constant 0 : index
    %c0_78 = arith.constant 0 : index
    %165 = vector.load %arg16[%c0_76, %c0_77, %c0_78] : memref<1x32x32xbf16, #tpu.memory_space<vmem>>, vector<1x32x32xbf16>
    %166 = vector.shape_cast %165 : vector<1x32x32xbf16> to vector<32x32xbf16>
    %c0_79 = arith.constant 0 : index
    %c0_80 = arith.constant 0 : index
    %c0_81 = arith.constant 0 : index
    %167 = vector.load %arg17[%c0_79, %c0_80, %c0_81] : memref<1x1x32xf32, #tpu.memory_space<vmem>>, vector<1x1x32xf32>
    %168 = vector.shape_cast %167 : vector<1x1x32xf32> to vector<1x32xf32>
    %c0_82 = arith.constant 0 : index
    %c0_83 = arith.constant 0 : index
    %c0_84 = arith.constant 0 : index
    %169 = vector.load %arg5[%c0_82, %c0_83, %c0_84] : memref<1x1x10xf32, #tpu.memory_space<vmem>>, vector<1x1x10xf32>
    %cst_85 = arith.constant 0.000000e+00 : f32
    %170 = vector.broadcast %cst_85 : f32 to vector<1x8x32xf32>
    %171 = vector.shape_cast %168 : vector<1x32xf32> to vector<1x1x32xf32>
    %172 = vector.broadcast %171 : vector<1x1x32xf32> to vector<1x8x32xf32>
    %173 = arith.addf %170, %172 : vector<1x8x32xf32>
    %174 = vector.extract_strided_slice %158 {offsets = [0, 0, 0], sizes = [1, 8, 8], strides = [1, 1, 1]} : vector<1x8x32xbf16> to vector<1x8x8xbf16>
    %cst_86 = arith.constant dense<0.000000e+00> : vector<1x8x8xf32>
    %175 = tpu.matmul %174, %160, %cst_86 {dimension_numbers = #tpu.dot_dimension_numbers<[2], [0], [0, 1], [1], [0, 0, 0, 1, 1, 1], [], []>} : vector<1x8x8xbf16>, vector<8x8xbf16>, vector<1x8x8xf32> -> vector<1x8x8xf32>
    %176 = vector.extract_strided_slice %4 {offsets = [0, 0, 0], sizes = [1, 10, 8], strides = [1, 1, 1]} : vector<1x10x32xbf16> to vector<1x10x8xbf16>
    %cst_87 = arith.constant dense<0.000000e+00> : vector<1x10x8xf32>
    %177 = tpu.matmul %176, %162, %cst_87 {dimension_numbers = #tpu.dot_dimension_numbers<[2], [0], [0, 1], [1], [0, 0, 0, 1, 1, 1], [], []>} : vector<1x10x8xbf16>, vector<8x8xbf16>, vector<1x10x8xf32> -> vector<1x10x8xf32>
    %178 = vector.extract_strided_slice %4 {offsets = [0, 0, 0], sizes = [1, 10, 8], strides = [1, 1, 1]} : vector<1x10x32xbf16> to vector<1x10x8xbf16>
    %cst_88 = arith.constant dense<0.000000e+00> : vector<1x10x8xf32>
    %179 = tpu.matmul %178, %164, %cst_88 {dimension_numbers = #tpu.dot_dimension_numbers<[2], [0], [0, 1], [1], [0, 0, 0, 1, 1, 1], [], []>} : vector<1x10x8xbf16>, vector<8x8xbf16>, vector<1x10x8xf32> -> vector<1x10x8xf32>
    %180 = arith.truncf %175 : vector<1x8x8xf32> to vector<1x8x8xbf16>
    %181 = arith.truncf %177 : vector<1x10x8xf32> to vector<1x10x8xbf16>
    %cst_89 = arith.constant dense<0.000000e+00> : vector<1x8x10xf32>
    %182 = tpu.matmul %180, %181, %cst_89 {dimension_numbers = #tpu.dot_dimension_numbers<[2], [2], [1], [1], [0, 0, 0, 1, 1, 1], [0], [0]>} : vector<1x8x8xbf16>, vector<1x10x8xbf16>, vector<1x8x10xf32> -> vector<1x8x10xf32>
    %183 = vector.broadcast %169 : vector<1x1x10xf32> to vector<1x8x10xf32>
    %184 = arith.addf %182, %183 : vector<1x8x10xf32>
    %cst_90 = arith.constant dense<0xFF800000> : vector<1x8xf32>
    %185 = vector.multi_reduction <maximumf>, %184, %cst_90 [2] : vector<1x8x10xf32> to vector<1x8xf32>
    %186 = vector.shape_cast %185 : vector<1x8xf32> to vector<1x8x1xf32>
    %187 = vector.broadcast %186 : vector<1x8x1xf32> to vector<1x8x10xf32>
    %188 = arith.subf %184, %187 : vector<1x8x10xf32>
    %189 = math.exp %188 : vector<1x8x10xf32>
    %cst_91 = arith.constant dense<0.000000e+00> : vector<1x8xf32>
    %190 = vector.multi_reduction <add>, %189, %cst_91 [2] : vector<1x8x10xf32> to vector<1x8xf32>
    %191 = vector.shape_cast %190 : vector<1x8xf32> to vector<1x8x1xf32>
    %192 = tpu.reciprocal %191 {approx = true} : vector<1x8x1xf32> -> vector<1x8x1xf32>
    %193 = vector.broadcast %192 : vector<1x8x1xf32> to vector<1x8x10xf32>
    %194 = arith.mulf %189, %193 : vector<1x8x10xf32>
    %195 = arith.truncf %194 : vector<1x8x10xf32> to vector<1x8x10xbf16>
    %196 = arith.truncf %179 : vector<1x10x8xf32> to vector<1x10x8xbf16>
    %cst_92 = arith.constant dense<0.000000e+00> : vector<1x8x8xf32>
    %197 = tpu.matmul %195, %196, %cst_92 {dimension_numbers = #tpu.dot_dimension_numbers<[2], [1], [1], [2], [0, 0, 0, 1, 1, 2], [0], [0]>} : vector<1x8x10xbf16>, vector<1x10x8xbf16>, vector<1x8x8xf32> -> vector<1x8x8xf32>
    %198 = vector.extract_strided_slice %166 {offsets = [0, 0], sizes = [8, 32], strides = [1, 1]} : vector<32x32xbf16> to vector<8x32xbf16>
    %199 = arith.truncf %197 : vector<1x8x8xf32> to vector<1x8x8xbf16>
    %cst_93 = arith.constant dense<0.000000e+00> : vector<1x8x32xf32>
    %200 = tpu.matmul %199, %198, %cst_93 {dimension_numbers = #tpu.dot_dimension_numbers<[2], [0], [0, 1], [1], [0, 0, 0, 1, 1, 1], [], []>} : vector<1x8x8xbf16>, vector<8x32xbf16>, vector<1x8x32xf32> -> vector<1x8x32xf32>
    %201 = arith.addf %173, %200 : vector<1x8x32xf32>
    %202 = vector.extract_strided_slice %158 {offsets = [0, 0, 8], sizes = [1, 8, 8], strides = [1, 1, 1]} : vector<1x8x32xbf16> to vector<1x8x8xbf16>
    %cst_94 = arith.constant dense<0.000000e+00> : vector<1x8x8xf32>
    %203 = tpu.matmul %202, %160, %cst_94 {dimension_numbers = #tpu.dot_dimension_numbers<[2], [0], [0, 1], [1], [0, 0, 0, 1, 1, 1], [], []>} : vector<1x8x8xbf16>, vector<8x8xbf16>, vector<1x8x8xf32> -> vector<1x8x8xf32>
    %204 = vector.extract_strided_slice %4 {offsets = [0, 0, 8], sizes = [1, 10, 8], strides = [1, 1, 1]} : vector<1x10x32xbf16> to vector<1x10x8xbf16>
    %cst_95 = arith.constant dense<0.000000e+00> : vector<1x10x8xf32>
    %205 = tpu.matmul %204, %162, %cst_95 {dimension_numbers = #tpu.dot_dimension_numbers<[2], [0], [0, 1], [1], [0, 0, 0, 1, 1, 1], [], []>} : vector<1x10x8xbf16>, vector<8x8xbf16>, vector<1x10x8xf32> -> vector<1x10x8xf32>
    %206 = vector.extract_strided_slice %4 {offsets = [0, 0, 8], sizes = [1, 10, 8], strides = [1, 1, 1]} : vector<1x10x32xbf16> to vector<1x10x8xbf16>
    %cst_96 = arith.constant dense<0.000000e+00> : vector<1x10x8xf32>
    %207 = tpu.matmul %206, %164, %cst_96 {dimension_numbers = #tpu.dot_dimension_numbers<[2], [0], [0, 1], [1], [0, 0, 0, 1, 1, 1], [], []>} : vector<1x10x8xbf16>, vector<8x8xbf16>, vector<1x10x8xf32> -> vector<1x10x8xf32>
    %208 = arith.truncf %203 : vector<1x8x8xf32> to vector<1x8x8xbf16>
    %209 = arith.truncf %205 : vector<1x10x8xf32> to vector<1x10x8xbf16>
    %cst_97 = arith.constant dense<0.000000e+00> : vector<1x8x10xf32>
    %210 = tpu.matmul %208, %209, %cst_97 {dimension_numbers = #tpu.dot_dimension_numbers<[2], [2], [1], [1], [0, 0, 0, 1, 1, 1], [0], [0]>} : vector<1x8x8xbf16>, vector<1x10x8xbf16>, vector<1x8x10xf32> -> vector<1x8x10xf32>
    %211 = vector.broadcast %169 : vector<1x1x10xf32> to vector<1x8x10xf32>
    %212 = arith.addf %210, %211 : vector<1x8x10xf32>
    %cst_98 = arith.constant dense<0xFF800000> : vector<1x8xf32>
    %213 = vector.multi_reduction <maximumf>, %212, %cst_98 [2] : vector<1x8x10xf32> to vector<1x8xf32>
    %214 = vector.shape_cast %213 : vector<1x8xf32> to vector<1x8x1xf32>
    %215 = vector.broadcast %214 : vector<1x8x1xf32> to vector<1x8x10xf32>
    %216 = arith.subf %212, %215 : vector<1x8x10xf32>
    %217 = math.exp %216 : vector<1x8x10xf32>
    %cst_99 = arith.constant dense<0.000000e+00> : vector<1x8xf32>
    %218 = vector.multi_reduction <add>, %217, %cst_99 [2] : vector<1x8x10xf32> to vector<1x8xf32>
    %219 = vector.shape_cast %218 : vector<1x8xf32> to vector<1x8x1xf32>
    %220 = tpu.reciprocal %219 {approx = true} : vector<1x8x1xf32> -> vector<1x8x1xf32>
    %221 = vector.broadcast %220 : vector<1x8x1xf32> to vector<1x8x10xf32>
    %222 = arith.mulf %217, %221 : vector<1x8x10xf32>
    %223 = arith.truncf %222 : vector<1x8x10xf32> to vector<1x8x10xbf16>
    %224 = arith.truncf %207 : vector<1x10x8xf32> to vector<1x10x8xbf16>
    %cst_100 = arith.constant dense<0.000000e+00> : vector<1x8x8xf32>
    %225 = tpu.matmul %223, %224, %cst_100 {dimension_numbers = #tpu.dot_dimension_numbers<[2], [1], [1], [2], [0, 0, 0, 1, 1, 2], [0], [0]>} : vector<1x8x10xbf16>, vector<1x10x8xbf16>, vector<1x8x8xf32> -> vector<1x8x8xf32>
    %226 = vector.extract_strided_slice %166 {offsets = [8, 0], sizes = [8, 32], strides = [1, 1]} : vector<32x32xbf16> to vector<8x32xbf16>
    %227 = arith.truncf %225 : vector<1x8x8xf32> to vector<1x8x8xbf16>
    %cst_101 = arith.constant dense<0.000000e+00> : vector<1x8x32xf32>
    %228 = tpu.matmul %227, %226, %cst_101 {dimension_numbers = #tpu.dot_dimension_numbers<[2], [0], [0, 1], [1], [0, 0, 0, 1, 1, 1], [], []>} : vector<1x8x8xbf16>, vector<8x32xbf16>, vector<1x8x32xf32> -> vector<1x8x32xf32>
    %229 = arith.addf %201, %228 : vector<1x8x32xf32>
    %230 = vector.extract_strided_slice %158 {offsets = [0, 0, 16], sizes = [1, 8, 8], strides = [1, 1, 1]} : vector<1x8x32xbf16> to vector<1x8x8xbf16>
    %cst_102 = arith.constant dense<0.000000e+00> : vector<1x8x8xf32>
    %231 = tpu.matmul %230, %160, %cst_102 {dimension_numbers = #tpu.dot_dimension_numbers<[2], [0], [0, 1], [1], [0, 0, 0, 1, 1, 1], [], []>} : vector<1x8x8xbf16>, vector<8x8xbf16>, vector<1x8x8xf32> -> vector<1x8x8xf32>
    %232 = vector.extract_strided_slice %4 {offsets = [0, 0, 16], sizes = [1, 10, 8], strides = [1, 1, 1]} : vector<1x10x32xbf16> to vector<1x10x8xbf16>
    %cst_103 = arith.constant dense<0.000000e+00> : vector<1x10x8xf32>
    %233 = tpu.matmul %232, %162, %cst_103 {dimension_numbers = #tpu.dot_dimension_numbers<[2], [0], [0, 1], [1], [0, 0, 0, 1, 1, 1], [], []>} : vector<1x10x8xbf16>, vector<8x8xbf16>, vector<1x10x8xf32> -> vector<1x10x8xf32>
    %234 = vector.extract_strided_slice %4 {offsets = [0, 0, 16], sizes = [1, 10, 8], strides = [1, 1, 1]} : vector<1x10x32xbf16> to vector<1x10x8xbf16>
    %cst_104 = arith.constant dense<0.000000e+00> : vector<1x10x8xf32>
    %235 = tpu.matmul %234, %164, %cst_104 {dimension_numbers = #tpu.dot_dimension_numbers<[2], [0], [0, 1], [1], [0, 0, 0, 1, 1, 1], [], []>} : vector<1x10x8xbf16>, vector<8x8xbf16>, vector<1x10x8xf32> -> vector<1x10x8xf32>
    %236 = arith.truncf %231 : vector<1x8x8xf32> to vector<1x8x8xbf16>
    %237 = arith.truncf %233 : vector<1x10x8xf32> to vector<1x10x8xbf16>
    %cst_105 = arith.constant dense<0.000000e+00> : vector<1x8x10xf32>
    %238 = tpu.matmul %236, %237, %cst_105 {dimension_numbers = #tpu.dot_dimension_numbers<[2], [2], [1], [1], [0, 0, 0, 1, 1, 1], [0], [0]>} : vector<1x8x8xbf16>, vector<1x10x8xbf16>, vector<1x8x10xf32> -> vector<1x8x10xf32>
    %239 = vector.broadcast %169 : vector<1x1x10xf32> to vector<1x8x10xf32>
    %240 = arith.addf %238, %239 : vector<1x8x10xf32>
    %cst_106 = arith.constant dense<0xFF800000> : vector<1x8xf32>
    %241 = vector.multi_reduction <maximumf>, %240, %cst_106 [2] : vector<1x8x10xf32> to vector<1x8xf32>
    %242 = vector.shape_cast %241 : vector<1x8xf32> to vector<1x8x1xf32>
    %243 = vector.broadcast %242 : vector<1x8x1xf32> to vector<1x8x10xf32>
    %244 = arith.subf %240, %243 : vector<1x8x10xf32>
    %245 = math.exp %244 : vector<1x8x10xf32>
    %cst_107 = arith.constant dense<0.000000e+00> : vector<1x8xf32>
    %246 = vector.multi_reduction <add>, %245, %cst_107 [2] : vector<1x8x10xf32> to vector<1x8xf32>
    %247 = vector.shape_cast %246 : vector<1x8xf32> to vector<1x8x1xf32>
    %248 = tpu.reciprocal %247 {approx = true} : vector<1x8x1xf32> -> vector<1x8x1xf32>
    %249 = vector.broadcast %248 : vector<1x8x1xf32> to vector<1x8x10xf32>
    %250 = arith.mulf %245, %249 : vector<1x8x10xf32>
    %251 = arith.truncf %250 : vector<1x8x10xf32> to vector<1x8x10xbf16>
    %252 = arith.truncf %235 : vector<1x10x8xf32> to vector<1x10x8xbf16>
    %cst_108 = arith.constant dense<0.000000e+00> : vector<1x8x8xf32>
    %253 = tpu.matmul %251, %252, %cst_108 {dimension_numbers = #tpu.dot_dimension_numbers<[2], [1], [1], [2], [0, 0, 0, 1, 1, 2], [0], [0]>} : vector<1x8x10xbf16>, vector<1x10x8xbf16>, vector<1x8x8xf32> -> vector<1x8x8xf32>
    %254 = vector.extract_strided_slice %166 {offsets = [16, 0], sizes = [8, 32], strides = [1, 1]} : vector<32x32xbf16> to vector<8x32xbf16>
    %255 = arith.truncf %253 : vector<1x8x8xf32> to vector<1x8x8xbf16>
    %cst_109 = arith.constant dense<0.000000e+00> : vector<1x8x32xf32>
    %256 = tpu.matmul %255, %254, %cst_109 {dimension_numbers = #tpu.dot_dimension_numbers<[2], [0], [0, 1], [1], [0, 0, 0, 1, 1, 1], [], []>} : vector<1x8x8xbf16>, vector<8x32xbf16>, vector<1x8x32xf32> -> vector<1x8x32xf32>
    %257 = arith.addf %229, %256 : vector<1x8x32xf32>
    %258 = vector.extract_strided_slice %158 {offsets = [0, 0, 24], sizes = [1, 8, 8], strides = [1, 1, 1]} : vector<1x8x32xbf16> to vector<1x8x8xbf16>
    %cst_110 = arith.constant dense<0.000000e+00> : vector<1x8x8xf32>
    %259 = tpu.matmul %258, %160, %cst_110 {dimension_numbers = #tpu.dot_dimension_numbers<[2], [0], [0, 1], [1], [0, 0, 0, 1, 1, 1], [], []>} : vector<1x8x8xbf16>, vector<8x8xbf16>, vector<1x8x8xf32> -> vector<1x8x8xf32>
    %260 = vector.extract_strided_slice %4 {offsets = [0, 0, 24], sizes = [1, 10, 8], strides = [1, 1, 1]} : vector<1x10x32xbf16> to vector<1x10x8xbf16>
    %cst_111 = arith.constant dense<0.000000e+00> : vector<1x10x8xf32>
    %261 = tpu.matmul %260, %162, %cst_111 {dimension_numbers = #tpu.dot_dimension_numbers<[2], [0], [0, 1], [1], [0, 0, 0, 1, 1, 1], [], []>} : vector<1x10x8xbf16>, vector<8x8xbf16>, vector<1x10x8xf32> -> vector<1x10x8xf32>
    %262 = vector.extract_strided_slice %4 {offsets = [0, 0, 24], sizes = [1, 10, 8], strides = [1, 1, 1]} : vector<1x10x32xbf16> to vector<1x10x8xbf16>
    %cst_112 = arith.constant dense<0.000000e+00> : vector<1x10x8xf32>
    %263 = tpu.matmul %262, %164, %cst_112 {dimension_numbers = #tpu.dot_dimension_numbers<[2], [0], [0, 1], [1], [0, 0, 0, 1, 1, 1], [], []>} : vector<1x10x8xbf16>, vector<8x8xbf16>, vector<1x10x8xf32> -> vector<1x10x8xf32>
    %264 = arith.truncf %259 : vector<1x8x8xf32> to vector<1x8x8xbf16>
    %265 = arith.truncf %261 : vector<1x10x8xf32> to vector<1x10x8xbf16>
    %cst_113 = arith.constant dense<0.000000e+00> : vector<1x8x10xf32>
    %266 = tpu.matmul %264, %265, %cst_113 {dimension_numbers = #tpu.dot_dimension_numbers<[2], [2], [1], [1], [0, 0, 0, 1, 1, 1], [0], [0]>} : vector<1x8x8xbf16>, vector<1x10x8xbf16>, vector<1x8x10xf32> -> vector<1x8x10xf32>
    %267 = vector.broadcast %169 : vector<1x1x10xf32> to vector<1x8x10xf32>
    %268 = arith.addf %266, %267 : vector<1x8x10xf32>
    %cst_114 = arith.constant dense<0xFF800000> : vector<1x8xf32>
    %269 = vector.multi_reduction <maximumf>, %268, %cst_114 [2] : vector<1x8x10xf32> to vector<1x8xf32>
    %270 = vector.shape_cast %269 : vector<1x8xf32> to vector<1x8x1xf32>
    %271 = vector.broadcast %270 : vector<1x8x1xf32> to vector<1x8x10xf32>
    %272 = arith.subf %268, %271 : vector<1x8x10xf32>
    %273 = math.exp %272 : vector<1x8x10xf32>
    %cst_115 = arith.constant dense<0.000000e+00> : vector<1x8xf32>
    %274 = vector.multi_reduction <add>, %273, %cst_115 [2] : vector<1x8x10xf32> to vector<1x8xf32>
    %275 = vector.shape_cast %274 : vector<1x8xf32> to vector<1x8x1xf32>
    %276 = tpu.reciprocal %275 {approx = true} : vector<1x8x1xf32> -> vector<1x8x1xf32>
    %277 = vector.broadcast %276 : vector<1x8x1xf32> to vector<1x8x10xf32>
    %278 = arith.mulf %273, %277 : vector<1x8x10xf32>
    %279 = arith.truncf %278 : vector<1x8x10xf32> to vector<1x8x10xbf16>
    %280 = arith.truncf %263 : vector<1x10x8xf32> to vector<1x10x8xbf16>
    %cst_116 = arith.constant dense<0.000000e+00> : vector<1x8x8xf32>
    %281 = tpu.matmul %279, %280, %cst_116 {dimension_numbers = #tpu.dot_dimension_numbers<[2], [1], [1], [2], [0, 0, 0, 1, 1, 2], [0], [0]>} : vector<1x8x10xbf16>, vector<1x10x8xbf16>, vector<1x8x8xf32> -> vector<1x8x8xf32>
    %282 = vector.extract_strided_slice %166 {offsets = [24, 0], sizes = [8, 32], strides = [1, 1]} : vector<32x32xbf16> to vector<8x32xbf16>
    %283 = arith.truncf %281 : vector<1x8x8xf32> to vector<1x8x8xbf16>
    %cst_117 = arith.constant dense<0.000000e+00> : vector<1x8x32xf32>
    %284 = tpu.matmul %283, %282, %cst_117 {dimension_numbers = #tpu.dot_dimension_numbers<[2], [0], [0, 1], [1], [0, 0, 0, 1, 1, 1], [], []>} : vector<1x8x8xbf16>, vector<8x32xbf16>, vector<1x8x32xf32> -> vector<1x8x32xf32>
    %285 = arith.addf %257, %284 : vector<1x8x32xf32>
    %286 = arith.addf %285, %157 : vector<1x8x32xf32>
    %c0_118 = arith.constant 0 : index
    %c0_119 = arith.constant 0 : index
    %c0_120 = arith.constant 0 : index
    %287 = vector.load %arg18[%c0_118, %c0_119, %c0_120] : memref<1x1x32xf32, #tpu.memory_space<vmem>>, vector<1x1x32xf32>
    %288 = vector.shape_cast %287 : vector<1x1x32xf32> to vector<1x32xf32>
    %c0_121 = arith.constant 0 : index
    %c0_122 = arith.constant 0 : index
    %c0_123 = arith.constant 0 : index
    %289 = vector.load %arg19[%c0_121, %c0_122, %c0_123] : memref<1x1x32xf32, #tpu.memory_space<vmem>>, vector<1x1x32xf32>
    %290 = vector.shape_cast %289 : vector<1x1x32xf32> to vector<1x32xf32>
    %cst_124 = arith.constant dense<0.000000e+00> : vector<1x8xf32>
    %291 = vector.multi_reduction <add>, %286, %cst_124 [2] : vector<1x8x32xf32> to vector<1x8xf32>
    %292 = vector.shape_cast %291 : vector<1x8xf32> to vector<1x8x1xf32>
    %cst_125 = arith.constant 3.200000e+01 : f32
    %293 = vector.broadcast %cst_125 : f32 to vector<1x8x1xf32>
    %294 = arith.divf %292, %293 : vector<1x8x1xf32>
    %295 = vector.broadcast %294 : vector<1x8x1xf32> to vector<1x8x32xf32>
    %296 = arith.subf %286, %295 : vector<1x8x32xf32>
    %297 = arith.mulf %296, %296 : vector<1x8x32xf32>
    %cst_126 = arith.constant dense<0.000000e+00> : vector<1x8xf32>
    %298 = vector.multi_reduction <add>, %297, %cst_126 [2] : vector<1x8x32xf32> to vector<1x8xf32>
    %299 = vector.shape_cast %298 : vector<1x8xf32> to vector<1x8x1xf32>
    %cst_127 = arith.constant 3.200000e+01 : f32
    %300 = vector.broadcast %cst_127 : f32 to vector<1x8x1xf32>
    %301 = arith.divf %299, %300 : vector<1x8x1xf32>
    %302 = vector.broadcast %294 : vector<1x8x1xf32> to vector<1x8x32xf32>
    %303 = arith.subf %286, %302 : vector<1x8x32xf32>
    %cst_128 = arith.constant 9.99999974E-6 : f32
    %304 = vector.broadcast %cst_128 : f32 to vector<1x8x1xf32>
    %305 = arith.addf %301, %304 : vector<1x8x1xf32>
    %306 = math.rsqrt %305 : vector<1x8x1xf32>
    %307 = vector.broadcast %306 : vector<1x8x1xf32> to vector<1x8x32xf32>
    %308 = arith.mulf %303, %307 : vector<1x8x32xf32>
    %309 = vector.shape_cast %288 : vector<1x32xf32> to vector<1x1x32xf32>
    %310 = vector.broadcast %309 : vector<1x1x32xf32> to vector<1x8x32xf32>
    %311 = arith.mulf %308, %310 : vector<1x8x32xf32>
    %312 = vector.shape_cast %290 : vector<1x32xf32> to vector<1x1x32xf32>
    %313 = vector.broadcast %312 : vector<1x1x32xf32> to vector<1x8x32xf32>
    %314 = arith.addf %311, %313 : vector<1x8x32xf32>
    %c0_129 = arith.constant 0 : index
    %c0_130 = arith.constant 0 : index
    %c0_131 = arith.constant 0 : index
    %315 = vector.load %arg20[%c0_129, %c0_130, %c0_131] : memref<1x32x64xbf16, #tpu.memory_space<vmem>>, vector<1x32x64xbf16>
    %316 = vector.shape_cast %315 : vector<1x32x64xbf16> to vector<32x64xbf16>
    %317 = arith.truncf %314 : vector<1x8x32xf32> to vector<1x8x32xbf16>
    %cst_132 = arith.constant dense<0.000000e+00> : vector<1x8x64xf32>
    %318 = tpu.matmul %317, %316, %cst_132 {dimension_numbers = #tpu.dot_dimension_numbers<[2], [0], [0, 1], [1], [0, 0, 0, 1, 1, 1], [], []>} : vector<1x8x32xbf16>, vector<32x64xbf16>, vector<1x8x64xf32> -> vector<1x8x64xf32>
    %c0_133 = arith.constant 0 : index
    %c0_134 = arith.constant 0 : index
    %c0_135 = arith.constant 0 : index
    %319 = vector.load %arg21[%c0_133, %c0_134, %c0_135] : memref<1x1x64xf32, #tpu.memory_space<vmem>>, vector<1x1x64xf32>
    %320 = vector.shape_cast %319 : vector<1x1x64xf32> to vector<1x64xf32>
    %321 = vector.shape_cast %320 : vector<1x64xf32> to vector<1x1x64xf32>
    %322 = vector.broadcast %321 : vector<1x1x64xf32> to vector<1x8x64xf32>
    %323 = arith.addf %318, %322 : vector<1x8x64xf32>
    %cst_136 = arith.constant 0.000000e+00 : f32
    %324 = vector.broadcast %cst_136 : f32 to vector<1x8x64xf32>
    %325 = arith.maximumf %323, %324 : vector<1x8x64xf32>
    %c0_137 = arith.constant 0 : index
    %c0_138 = arith.constant 0 : index
    %c0_139 = arith.constant 0 : index
    %326 = vector.load %arg22[%c0_137, %c0_138, %c0_139] : memref<1x64x32xbf16, #tpu.memory_space<vmem>>, vector<1x64x32xbf16>
    %327 = vector.shape_cast %326 : vector<1x64x32xbf16> to vector<64x32xbf16>
    %328 = arith.truncf %325 : vector<1x8x64xf32> to vector<1x8x64xbf16>
    %cst_140 = arith.constant dense<0.000000e+00> : vector<1x8x32xf32>
    %329 = tpu.matmul %328, %327, %cst_140 {dimension_numbers = #tpu.dot_dimension_numbers<[2], [0], [0, 1], [1], [0, 0, 0, 1, 1, 1], [], []>} : vector<1x8x64xbf16>, vector<64x32xbf16>, vector<1x8x32xf32> -> vector<1x8x32xf32>
    %c0_141 = arith.constant 0 : index
    %c0_142 = arith.constant 0 : index
    %c0_143 = arith.constant 0 : index
    %330 = vector.load %arg23[%c0_141, %c0_142, %c0_143] : memref<1x1x32xf32, #tpu.memory_space<vmem>>, vector<1x1x32xf32>
    %331 = vector.shape_cast %330 : vector<1x1x32xf32> to vector<1x32xf32>
    %332 = vector.shape_cast %331 : vector<1x32xf32> to vector<1x1x32xf32>
    %333 = vector.broadcast %332 : vector<1x1x32xf32> to vector<1x8x32xf32>
    %334 = arith.addf %329, %333 : vector<1x8x32xf32>
    %335 = arith.addf %334, %314 : vector<1x8x32xf32>
    %c0_144 = arith.constant 0 : index
    %c0_145 = arith.constant 0 : index
    %c0_146 = arith.constant 0 : index
    %336 = vector.load %arg24[%c0_144, %c0_145, %c0_146] : memref<1x1x32xf32, #tpu.memory_space<vmem>>, vector<1x1x32xf32>
    %337 = vector.shape_cast %336 : vector<1x1x32xf32> to vector<1x32xf32>
    %c0_147 = arith.constant 0 : index
    %c0_148 = arith.constant 0 : index
    %c0_149 = arith.constant 0 : index
    %338 = vector.load %arg25[%c0_147, %c0_148, %c0_149] : memref<1x1x32xf32, #tpu.memory_space<vmem>>, vector<1x1x32xf32>
    %339 = vector.shape_cast %338 : vector<1x1x32xf32> to vector<1x32xf32>
    %cst_150 = arith.constant dense<0.000000e+00> : vector<1x8xf32>
    %340 = vector.multi_reduction <add>, %335, %cst_150 [2] : vector<1x8x32xf32> to vector<1x8xf32>
    %341 = vector.shape_cast %340 : vector<1x8xf32> to vector<1x8x1xf32>
    %cst_151 = arith.constant 3.200000e+01 : f32
    %342 = vector.broadcast %cst_151 : f32 to vector<1x8x1xf32>
    %343 = arith.divf %341, %342 : vector<1x8x1xf32>
    %344 = vector.broadcast %343 : vector<1x8x1xf32> to vector<1x8x32xf32>
    %345 = arith.subf %335, %344 : vector<1x8x32xf32>
    %346 = arith.mulf %345, %345 : vector<1x8x32xf32>
    %cst_152 = arith.constant dense<0.000000e+00> : vector<1x8xf32>
    %347 = vector.multi_reduction <add>, %346, %cst_152 [2] : vector<1x8x32xf32> to vector<1x8xf32>
    %348 = vector.shape_cast %347 : vector<1x8xf32> to vector<1x8x1xf32>
    %cst_153 = arith.constant 3.200000e+01 : f32
    %349 = vector.broadcast %cst_153 : f32 to vector<1x8x1xf32>
    %350 = arith.divf %348, %349 : vector<1x8x1xf32>
    %351 = vector.broadcast %343 : vector<1x8x1xf32> to vector<1x8x32xf32>
    %352 = arith.subf %335, %351 : vector<1x8x32xf32>
    %cst_154 = arith.constant 9.99999974E-6 : f32
    %353 = vector.broadcast %cst_154 : f32 to vector<1x8x1xf32>
    %354 = arith.addf %350, %353 : vector<1x8x1xf32>
    %355 = math.rsqrt %354 : vector<1x8x1xf32>
    %356 = vector.broadcast %355 : vector<1x8x1xf32> to vector<1x8x32xf32>
    %357 = arith.mulf %352, %356 : vector<1x8x32xf32>
    %358 = vector.shape_cast %337 : vector<1x32xf32> to vector<1x1x32xf32>
    %359 = vector.broadcast %358 : vector<1x1x32xf32> to vector<1x8x32xf32>
    %360 = arith.mulf %357, %359 : vector<1x8x32xf32>
    %361 = vector.shape_cast %339 : vector<1x32xf32> to vector<1x1x32xf32>
    %362 = vector.broadcast %361 : vector<1x1x32xf32> to vector<1x8x32xf32>
    %363 = arith.addf %360, %362 : vector<1x8x32xf32>
    %c0_155 = arith.constant 0 : index
    %c0_156 = arith.constant 0 : index
    %c0_157 = arith.constant 0 : index
    %364 = vector.load %arg27[%c0_155, %c0_156, %c0_157] : memref<1x8x32xf32, #tpu.memory_space<vmem>>, vector<1x8x32xf32>
    tpu.vector_store %arg27[%c0_155, %c0_156, %c0_157], %363 {strides = array<i32>} : memref<1x8x32xf32, #tpu.memory_space<vmem>>, vector<1x8x32xf32>,
    %c1_i32 = arith.constant 1 : i32
    %365 = arith.cmpi eq, %arg1, %c1_i32 : i32
    %366 = arith.extui %365 : i1 to i32
    %c0_i32_158 = arith.constant 0 : i32
    %367 = arith.cmpi ne, %366, %c0_i32_158 : i32
    scf.if %367 {
      %368 = arith.truncf %363 : vector<1x8x32xf32> to vector<1x8x32xbf16>
      %c0_159 = arith.constant 0 : index
      %c0_160 = arith.constant 0 : index
      %c0_161 = arith.constant 0 : index
      %369 = vector.load %arg26[%c0_159, %c0_160, %c0_161] : memref<1x8x32xbf16, #tpu.memory_space<vmem>>, vector<1x8x32xbf16>
      tpu.vector_store %arg26[%c0_159, %c0_160, %c0_161], %368 {strides = array<i32>} : memref<1x8x32xbf16, #tpu.memory_space<vmem>>, vector<1x8x32xbf16>,
    } else {
    }
    return
  }
  func.func @transform_0(%arg0: i32, %arg1: i32) -> (i32, i32, i32) {
    %c0_i32 = arith.constant 0 : i32
    %c0_i32_0 = arith.constant 0 : i32
    %c0_i32_1 = arith.constant 0 : i32
    return %arg0, %c0_i32, %c0_i32_0 : i32, i32, i32
  }
  func.func @transform_1(%arg0: i32, %arg1: i32) -> (i32, i32, i32) {
    %c0_i32 = arith.constant 0 : i32
    %c0_i32_0 = arith.constant 0 : i32
    %c0_i32_1 = arith.constant 0 : i32
    return %arg0, %c0_i32, %c0_i32_0 : i32, i32, i32
  }
  func.func @transform_2(%arg0: i32, %arg1: i32) -> (i32, i32, i32) {
    %c0_i32 = arith.constant 0 : i32
    %c0_i32_0 = arith.constant 0 : i32
    %c0_i32_1 = arith.constant 0 : i32
    return %arg0, %c0_i32, %c0_i32_0 : i32, i32, i32
  }
  func.func @transform_3(%arg0: i32, %arg1: i32) -> (i32, i32, i32) {
    %c0_i32 = arith.constant 0 : i32
    %c0_i32_0 = arith.constant 0 : i32
    %c0_i32_1 = arith.constant 0 : i32
    return %arg0, %c0_i32, %c0_i32_0 : i32, i32, i32
  }
  func.func @transform_4(%arg0: i32, %arg1: i32) -> (i32, i32, i32) {
    %c0_i32 = arith.constant 0 : i32
    %c0_i32_0 = arith.constant 0 : i32
    %c0_i32_1 = arith.constant 0 : i32
    return %arg1, %c0_i32, %c0_i32_0 : i32, i32, i32
  }
  func.func @transform_5(%arg0: i32, %arg1: i32) -> (i32, i32, i32) {
    %c0_i32 = arith.constant 0 : i32
    %c0_i32_0 = arith.constant 0 : i32
    %c0_i32_1 = arith.constant 0 : i32
    return %arg1, %c0_i32, %c0_i32_0 : i32, i32, i32
  }
  func.func @transform_6(%arg0: i32, %arg1: i32) -> (i32, i32, i32) {
    %c0_i32 = arith.constant 0 : i32
    %c0_i32_0 = arith.constant 0 : i32
    %c0_i32_1 = arith.constant 0 : i32
    return %arg1, %c0_i32, %c0_i32_0 : i32, i32, i32
  }
  func.func @transform_7(%arg0: i32, %arg1: i32) -> (i32, i32, i32) {
    %c0_i32 = arith.constant 0 : i32
    %c0_i32_0 = arith.constant 0 : i32
    %c0_i32_1 = arith.constant 0 : i32
    return %arg1, %c0_i32, %c0_i32_0 : i32, i32, i32
  }
  func.func @transform_8(%arg0: i32, %arg1: i32) -> (i32, i32, i32) {
    %c0_i32 = arith.constant 0 : i32
    %c0_i32_0 = arith.constant 0 : i32
    %c0_i32_1 = arith.constant 0 : i32
    return %arg1, %c0_i32, %c0_i32_0 : i32, i32, i32
  }
  func.func @transform_9(%arg0: i32, %arg1: i32) -> (i32, i32, i32) {
    %c0_i32 = arith.constant 0 : i32
    %c0_i32_0 = arith.constant 0 : i32
    %c0_i32_1 = arith.constant 0 : i32
    return %arg1, %c0_i32, %c0_i32_0 : i32, i32, i32
  }
  func.func @transform_10(%arg0: i32, %arg1: i32) -> (i32, i32, i32) {
    %c0_i32 = arith.constant 0 : i32
    %c0_i32_0 = arith.constant 0 : i32
    %c0_i32_1 = arith.constant 0 : i32
    return %arg1, %c0_i32, %c0_i32_0 : i32, i32, i32
  }
  func.func @transform_11(%arg0: i32, %arg1: i32) -> (i32, i32, i32) {
    %c0_i32 = arith.constant 0 : i32
    %c0_i32_0 = arith.constant 0 : i32
    %c0_i32_1 = arith.constant 0 : i32
    return %arg1, %c0_i32, %c0_i32_0 : i32, i32, i32
  }
  func.func @transform_12(%arg0: i32, %arg1: i32) -> (i32, i32, i32) {
    %c0_i32 = arith.constant 0 : i32
    %c0_i32_0 = arith.constant 0 : i32
    %c0_i32_1 = arith.constant 0 : i32
    return %arg1, %c0_i32, %c0_i32_0 : i32, i32, i32
  }
  func.func @transform_13(%arg0: i32, %arg1: i32) -> (i32, i32, i32) {
    %c0_i32 = arith.constant 0 : i32
    %c0_i32_0 = arith.constant 0 : i32
    %c0_i32_1 = arith.constant 0 : i32
    return %arg1, %c0_i32, %c0_i32_0 : i32, i32, i32
  }
  func.func @transform_14(%arg0: i32, %arg1: i32) -> (i32, i32, i32) {
    %c0_i32 = arith.constant 0 : i32
    %c0_i32_0 = arith.constant 0 : i32
    %c0_i32_1 = arith.constant 0 : i32
    return %arg1, %c0_i32, %c0_i32_0 : i32, i32, i32
  }
  func.func @transform_15(%arg0: i32, %arg1: i32) -> (i32, i32, i32) {
    %c0_i32 = arith.constant 0 : i32
    %c0_i32_0 = arith.constant 0 : i32
    %c0_i32_1 = arith.constant 0 : i32
    return %arg1, %c0_i32, %c0_i32_0 : i32, i32, i32
  }
  func.func @transform_16(%arg0: i32, %arg1: i32) -> (i32, i32, i32) {
    %c0_i32 = arith.constant 0 : i32
    %c0_i32_0 = arith.constant 0 : i32
    %c0_i32_1 = arith.constant 0 : i32
    return %arg1, %c0_i32, %c0_i32_0 : i32, i32, i32
  }
  func.func @transform_17(%arg0: i32, %arg1: i32) -> (i32, i32, i32) {
    %c0_i32 = arith.constant 0 : i32
    %c0_i32_0 = arith.constant 0 : i32
    %c0_i32_1 = arith.constant 0 : i32
    return %arg1, %c0_i32, %c0_i32_0 : i32, i32, i32
  }
  func.func @transform_18(%arg0: i32, %arg1: i32) -> (i32, i32, i32) {
    %c0_i32 = arith.constant 0 : i32
    %c0_i32_0 = arith.constant 0 : i32
    %c0_i32_1 = arith.constant 0 : i32
    return %arg1, %c0_i32, %c0_i32_0 : i32, i32, i32
  }
  func.func @transform_19(%arg0: i32, %arg1: i32) -> (i32, i32, i32) {
    %c0_i32 = arith.constant 0 : i32
    %c0_i32_0 = arith.constant 0 : i32
    %c0_i32_1 = arith.constant 0 : i32
    return %arg1, %c0_i32, %c0_i32_0 : i32, i32, i32
  }
  func.func @transform_20(%arg0: i32, %arg1: i32) -> (i32, i32, i32) {
    %c0_i32 = arith.constant 0 : i32
    %c0_i32_0 = arith.constant 0 : i32
    %c0_i32_1 = arith.constant 0 : i32
    return %arg1, %c0_i32, %c0_i32_0 : i32, i32, i32
  }
  func.func @transform_21(%arg0: i32, %arg1: i32) -> (i32, i32, i32) {
    %c0_i32 = arith.constant 0 : i32
    %c0_i32_0 = arith.constant 0 : i32
    %c0_i32_1 = arith.constant 0 : i32
    return %arg1, %c0_i32, %c0_i32_0 : i32, i32, i32
  }
  func.func @transform_22(%arg0: i32, %arg1: i32) -> (i32, i32, i32) {
    %c0_i32 = arith.constant 0 : i32
    %c0_i32_0 = arith.constant 0 : i32
    %c0_i32_1 = arith.constant 0 : i32
    return %arg1, %c0_i32, %c0_i32_0 : i32, i32, i32
  }
  func.func @transform_23(%arg0: i32, %arg1: i32) -> (i32, i32, i32) {
    %c0_i32 = arith.constant 0 : i32
    %c0_i32_0 = arith.constant 0 : i32
    %c0_i32_1 = arith.constant 0 : i32
    return %arg1, %c0_i32, %c0_i32_0 : i32, i32, i32
  }
  func.func @transform_24(%arg0: i32, %arg1: i32) -> (i32, i32, i32) {
    %c0_i32 = arith.constant 0 : i32
    %c0_i32_0 = arith.constant 0 : i32
    %c0_i32_1 = arith.constant 0 : i32
    return %arg0, %c0_i32, %c0_i32_0 : i32, i32, i32
  }
}

</mosaic_0001>

<bundles_post_ra>
// kernel: decoder_forward.3
= control target key start
LH: loop header
LB: loop body
LE: loop exit
PB: predicated region body
PF: predicated region fallthrough
CT: control target
= control target key end

     0   :  { %v117_v0 = vmov 0.0   ;;  %vm118_vm0 = vmmov 0   ;;  %vm45_vm1 = vcmask 261120   ;;  %s157_s1 = inlined_call_operand.vmem [shape: bf16[32,128], index: 1, kind: input, shape index: {}]   ;;  %s158_s0 = inlined_call_operand.vmem [shape: bf16[16,32], index: 0, kind: input, shape index: {}]   ;;  %s159_s2 = inlined_call_operand.vmem [shape: f32[1,128], index: 2, kind: input, shape index: {}]   ;;  %s160_s3 = inlined_call_operand.vmem [shape: f32[16,128], index: 3, kind: output, shape index: {}]  }
   0x1   :  { %104 = vmatprep.subr.bf16.mxu0 %v117_v0  ;;  %v114_v1 = vld [vmem:[%s157_s1] sm:$0xff]   ;;  %108 = vmatprep.mubr.msk.bf16.mxu0 %vm118_vm0, %v117_v0  ;;  %v115_v2 = vld [vmem:[%s157_s1 + $0x8] sm:$0xff]  }
   0x2   :  { %105 = vmatpush3.bf16.msra.mxu0 %v114_v1  ;;  %v116_v3 = vld [vmem:[%s158_s0] sm:$0xff]  }
   0x3   :  { %106 = vmatprep.subr.bf16.mxu0 %v117_v0  ;;  %v96_v4 = vld [vmem:[%s159_s2] ss:$0 sm:$0xff] }
   0x6   :  { %107 = vmatpush3.bf16.msra.mxu0 %v115_v2 }
   0x9   :  { %109 = vmatmul.mubr.msk.bf16.vlgmr.msra.gmra.mrb[0].mxu0 %vm45_vm1, %v116_v3 }
  0xdc   :  { %v83_v5 = vpop.f32.mrb[0].mxu0 }
  0xdd   :  { %v84_v6 = vadd.f32 %v96_v4, %v83_v5  ;;  %v110_v7 = vpop.f32.mrb[1].mxu0 }
  0xde   :  { %v86_v8 = vpop.f32.mrb[2].mxu0 }
  0xdf   :  { %90 = vst [vmem:[%s160_s3] sm:$0xff] %v84_v6  ;;  %v87_v9 = vadd.f32 %v96_v4, %v86_v8  ;;  %v111_v10 = vpop.f32.mrb[3].mxu0 }
  0xe1   :  { %91 = vst [vmem:[%s160_s3 + $0x8] sm:$0xff] %v87_v9 }

// kernel: decoder_forward.2
= control target key start
LH: loop header
LB: loop body
LE: loop exit
PB: predicated region body
PF: predicated region fallthrough
CT: control target
= control target key end

     0   :  { %s4795_s26 = smov 0   ;;  %s4797_s27 = smov 0   ;;  %s5418_s0 = inlined_call_operand.vmem [shape: bf16[2,8,32], index: 0, kind: input, shape index: {}]   ;;  %s5419_s1 = inlined_call_operand.vmem [shape: bf16[2,10,32], index: 1, kind: input, shape index: {}]   ;;  %s5420_s2 = inlined_call_operand.vmem [shape: f32[2,8,8], index: 2, kind: input, shape index: {}]   ;;  %s5421_s3 = inlined_call_operand.vmem [shape: f32[2,1,10], index: 3, kind: input, shape index: {}]   ;;  %s5422_s4 = inlined_call_operand.vmem [shape: bf16[2,8,8], index: 4, kind: input, shape index: {}]   ;;  %s5423_s5 = inlined_call_operand.vmem [shape: bf16[2,8,8], index: 5, kind: input, shape index: {}]   ;;  %s5424_s6 = inlined_call_operand.vmem [shape: bf16[2,8,8], index: 6, kind: input, shape index: {}]   ;;  %s5425_s7 = inlined_call_operand.vmem [shape: bf16[2,32,32], index: 7, kind: input, shape index: {}]   ;;  %s5426_s8 = inlined_call_operand.vmem [shape: f32[2,1,32], index: 8, kind: input, shape index: {}]   ;;  %s5427_s9 = inlined_call_operand.vmem [shape: f32[2,1,32], index: 9, kind: input, shape index: {}]   ;;  %s5428_s10 = inlined_call_operand.vmem [shape: f32[2,1,32], index: 10, kind: input, shape index: {}]   ;;  %s5429_s11 = inlined_call_operand.vmem [shape: bf16[2,8,8], index: 11, kind: input, shape index: {}]   ;;  %s5430_s12 = inlined_call_operand.vmem [shape: bf16[2,8,8], index: 12, kind: input, shape index: {}]   ;;  %s5431_s13 = inlined_call_operand.vmem [shape: bf16[2,8,8], index: 13, kind: input, shape index: {}]   ;;  %s5432_s14 = inlined_call_operand.vmem [shape: bf16[2,32,32], index: 14, kind: input, shape index: {}]   ;;  %s5433_s15 = inlined_call_operand.vmem [shape: f32[2,1,32], index: 15, kind: input, shape index: {}]   ;;  %s5434_s16 = inlined_call_operand.vmem [shape: f32[2,1,32], index: 16, kind: input, shape index: {}]   ;;  %s5435_s17 = inlined_call_operand.vmem [shape: f32[2,1,32], index: 17, kind: input, shape index: {}]   ;;  %s5436_s18 = inlined_call_operand.vmem [shape: bf16[2,32,64], index: 18, kind: input, shape index: {}]   ;;  %s5437_s19 = inlined_call_operand.vmem [shape: f32[2,1,64], index: 19, kind: input, shape index: {}]   ;;  %s5438_s20 = inlined_call_operand.vmem [shape: bf16[2,64,32], index: 20, kind: input, shape index: {}]   ;;  %s5439_s21 = inlined_call_operand.vmem [shape: f32[2,1,32], index: 21, kind: input, shape index: {}]   ;;  %s5440_s22 = inlined_call_operand.vmem [shape: f32[2,1,32], index: 22, kind: input, shape index: {}]   ;;  %s5441_s23 = inlined_call_operand.vmem [shape: f32[2,1,32], index: 23, kind: input, shape index: {}]   ;;  %s5442_s24 = inlined_call_operand.vmem [shape: bf16[2,8,32], index: 24, kind: output, shape index: {}]  }
   0x1   :  { %5450 = sst [smem:[#allocation13_spill]] %s5418_s0  ;;  %s4799_s28 = smov 0  }
   0x2   :  { %5451 = sst [smem:[#allocation14_spill]] %s5419_s1 }
   0x3   :  { %5452 = sst [smem:[#allocation15_spill]] %s5420_s2 }
   0x4   :  { %5453 = sst [smem:[#allocation16_spill]] %s5421_s3 }
   0x5   :  { %5454 = sst [smem:[#allocation17_spill]] %s5422_s4 }
   0x6   :  { %5455 = sst [smem:[#allocation18_spill]] %s5423_s5  ;;  %s4793_s5 = smov 0  }
   0x7   :  { %5456 = sst [smem:[#allocation19_spill]] %s5424_s6  ;;  %s4801_s6 = smov 0  }
   0x8   :  { %5457 = sst [smem:[#allocation20_spill]] %s5425_s7 }
   0x9   :  { %5458 = sst [smem:[#allocation21_spill]] %s5426_s8 }
   0xa   :  { %5459 = sst [smem:[#allocation22_spill]] %s5428_s10 }
   0xb   :  { %5460 = sst [smem:[#allocation23_spill]] %s5431_s13 }
   0xc   :  { %5461 = sst [smem:[#allocation24_spill]] %s5432_s14 }
   0xd   :  { %5462 = sst [smem:[#allocation25_spill]] %s5433_s15 }
   0xe   :  { %5463 = sst [smem:[#allocation26_spill]] %s5434_s16 }
   0xf   :  { %5464 = sst [smem:[#allocation27_spill]] %s5435_s17 }
  0x10   :  { %5465 = sst [smem:[#allocation28_spill]] %s5436_s18 }
  0x11   :  { %5466 = sst [smem:[#allocation29_spill]] %s5437_s19 }
  0x12   :  { %5467 = sst [smem:[#allocation30_spill]] %s5438_s20 }
  0x13   :  { %5468 = sst [smem:[#allocation31_spill]] %s5439_s21 }
  0x14   :  { %5469 = sst [smem:[#allocation32_spill]] %s5440_s22 }
  0x15   :  { %5470 = sst [smem:[#allocation33_spill]] %s5441_s23 }
  0x16   :  { %5471 = sst [smem:[#allocation34_spill]] %s5442_s24 }
  0x17 LB: > { %5472 = sst [smem:[#allocation3_spill]] %s4645_s5  ;;  %s43_s2 = sadd.s32 1, %s4653_s27  ;;  %s4661_s6 = sphi %s4801_s6, %s34_s6   ;;  %s4657_s28 = sphi %s4799_s28, %s5541_s28   ;;  %s4653_s27 = sphi %s4797_s27, %s5540_s27   ;;  %s4649_s26 = sphi %s4795_s26, %s5539_s26   ;;  %s4645_s5 = sphi %s4793_s5, %s5538_s5  }
  0x18   : > { %5473 = sst [smem:[#allocation4_spill]] %s4653_s27  ;;  %s46_s29 = sadd.s32 1, %s4657_s28 }
  0x19   : > { %5474 = sst [smem:[#allocation5_spill]] %s4657_s28  ;;  %p44_p0 = scmp.ge.s32.totalorder %s43_s2, 2 }
  0x1a   : > { %5475 = sst [smem:[#allocation6_spill]] %s4661_s6  ;;  %p4024_p1 = scmp.ge.s32.totalorder %s4661_s6, 1 }
  0x1b   : > { %p874_p2 = scmp.lt.s32.totalorder %s4661_s6, 5  ;;  %s5543_s2 = smov (%p44_p0, %s43_s2), 0 }
  0x1c   : > { %5476 = sst [smem:[#allocation7_spill]] %s5543_s2  ;;  %s5545_s29 = smov (!%p44_p0, %s46_s29), %s4657_s28 }
  0x1d   : > { %p875_p3 = pnand %p4024_p1, %p874_p2  ;;  %p48_p4 = scmp.ge.s32.totalorder %s5545_s29, 2 }
  0x1f   : > { %s5547_s29 = smov (%p48_p4, %s5545_s29), 0  ;;  %878 = sbr.rel (%p875_p3) target bundleno = 9662 (0x25be), region = 116 }
  0x20   : > { %5477 = sst [smem:[#allocation8_spill]] %s5547_s29 }
  0x26   : > { %p1024_p5 = scmp.lt.s32.totalorder %s4649_s26, 1  ;;  %p1040_p6 = scmp.lt.s32.totalorder %s4645_s5, 1 }
  0x27   : > { %s5478_s8 = sld [smem:[#allocation13_spill]]  ;;  %s5479_s2 = sld [smem:[#allocation14_spill]] }
  0x28   : > { %s5549_s26 = smov (!%p1024_p5, %s4649_s26), 1  ;;  %s5485_s22 = sld [smem:[#allocation18_spill]] }
  0x29   : > { %s4829_s0 = scalar_select %p1040_p6, %s4645_s5, 1 }
  0x2a   : > { %s5447_s7 = sshll.u32 %s5549_s26, 2  ;;  %s4116_s30 = sshll.u32 %s5549_s26, 3 }
  0x2b   : > { %s5481_s5 = sld [smem:[#allocation15_spill]]  ;;  %s4853_s19 = sshll.u32 %s4829_s0, 2 }
  0x2c   : > { %s5491_s14 = sld [smem:[#allocation24_spill]]  ;;  %s5496_s29 = sld [smem:[#allocation28_spill]] }
  0x2d   : > { %s1027_s4 = scalar_lea.vmem %s5478_s8, %s5447_s7  ;;  %s4841_s28 = scalar_lea.vmem %s5479_s2, %s4116_s30 }
  0x2e   : > { %5480 = sst [smem:[#allocation9_spill]] %s4841_s28  ;;  %s4117_s2 = sshll.u32 %s4829_s0, 4 }
  0x2f   : > { %s1047_s20 = scalar_lea.vmem %s5485_s22, %s4853_s19  ;;  %s5487_s28 = sld [smem:[#allocation20_spill]] }
  0x30   : > { %s4120_s13 = sshll.u32 %s4829_s0, 5  ;;  %s5499_s23 = sld [smem:[#allocation31_spill]] }
  0x31   : > { %s4846_s24 = scalar_lea.vmem %s5481_s5, %s4116_s30  ;;  %s5500_s8 = sld [smem:[#allocation30_spill]] }
  0x32   : > { %5482 = sst [smem:[#allocation10_spill]] %s4846_s24  ;;  %s4900_s30 = scalar_lea.vmem %s5491_s14, %s4117_s2 }
  0x33   : > { %5492 = sst [smem:[#allocation11_spill]] %s4900_s30  ;;  %s4917_s27 = scalar_lea.vmem %s5496_s29, %s4117_s2 }
  0x34   : > { %5497 = sst [smem:[#allocation12_spill]] %s4917_s27  ;;  %s5501_s7 = sld [smem:[#allocation32_spill]] }
  0x35   : > { %s4871_s24 = scalar_lea.vmem %s5487_s28, %s4117_s2  ;;  %s5502_s29 = sld [smem:[#allocation33_spill]] }
  0x36   : > { %s1107_s15 = scalar_lea.vmem %s5499_s23, %s4829_s0  ;;  %s5503_s5 = sshll.u32 %s5549_s26, 2 }
  0x37   : > { %s4931_s16 = scalar_lea.vmem %s5500_s8, %s4120_s13  ;;  %s5504_s30 = sld [smem:[#allocation34_spill]] }
  0x38   : > { %s5505_s23 = sld [smem:[#allocation3_spill]] }
  0x3a   : > { %s1110_s10 = scalar_lea.vmem %s5501_s7, %s4829_s0 }
  0x3b   : > { %s1113_s17 = scalar_lea.vmem %s5502_s29, %s4829_s0 }
  0x3d   : > { %s4946_s27 = scalar_lea.vmem %s5504_s30, %s5503_s5 }
  0x3e   : > { %p4044_p7 = scmp.ne.s32.totalorder %s5505_s23, 0 }
  0x3f   : > { %v1123_v0 = vld [vmem:[%s1027_s4] sm:$0xf] (!%p4044_p7)  ;;  %vm1125_vm0 = vcmask (!%p4044_p7), 261120  }
  0x40   : > { %1122 = sbr.rel (%p4044_p7) target bundleno = 71 (0x47), region = 120  ;;  %v1124_v1 = vunpack.c.l.bf16 (!%p4044_p7), %v1123_v0 }
  0x42   : > { %1126 = vst.msk [vmem:[#allocation2] sm:$0xff] (!%p4044_p7), %vm1125_vm0, %v1124_v1 }
  0x47 PF: > { %v1132_v2 = vld [vmem:[%s1047_s20] sm:$0xf]  ;;  %vm1151_vm1 = vcmask 1043456   ;;  %v4663_v4 = vmov 0.0   ;;  %vm4664_vm2 = vmmov 0   ;;  %s5506_s20 = sld [smem:[#allocation17_spill]]  ;;  %s5514_s23 = scalar_lea.vmem %s5430_s12, %s4853_s19 }
  0x48   : > { %4231 = vmatprep.subr.bf16.mxu1 %v4663_v4  ;;  %v4953_v5 = vsel %vm1151_vm1, %v1132_v2, 0  ;;  %4233 = vmatprep.mubr.msk.bf16.mxu1 %vm4664_vm2, %v4663_v4  ;;  %vm1147_vm3 = vcmask 64512   ;;  %s5508_s8 = sld [smem:[#allocation10_spill]]  ;;  %s5509_s1 = sld [smem:[#allocation19_spill]]  ;;  %v1134_v40 = vld [vmem:[%s4871_s24] sm:$0xf] }
  0x49   : > { %v4949_v3 = vld [vmem:[#allocation2] sm:$0xff]  ;;  %4232 = vmatpush3.bf16.msra.mxu1 %v4953_v5  ;;  %4225 = vmatprep.subr.bf16.mxu0 %v4663_v4  ;;  %s4665_s21 = smov 120   ;;  %v1393_v41 = vsel %vm1151_vm1, %v1134_v40, 0  ;;  %s4666_s28 = smov 112   ;;  %vm2280_vm4 = vcmask 261120   ;;  %vm2522_vm5 = vcmask 80896  }
  0x4a   : > { %v4959_v6 = vpack.c.bf16 %v4949_v3, %v4949_v3  ;;  %4227 = vmatprep.mubr.msk.bf16.mxu0 %vm4664_vm2, %v4663_v4  ;;  %4243 = vmatprep.subr.bf16.mxu1 %v4663_v4  ;;  %s5511_s18 = sld [smem:[#allocation21_spill]]  ;;  %s4667_s5 = smov 104   ;;  %vm2539_vm6 = vcmask 1044480   ;;  %vm3631_vm7 = vcmask 523264  }
  0x4b   : > { %s5516_s3 = scalar_lea.vmem %s5427_s9, %s4829_s0 }
  0x4c   : > { %4234 = vmatmul.mubr.msk.bf16.vlgmr.msra.gmra.mrb[0].mxu1 %vm1147_vm3, %v4959_v6  ;;  %1437 = vrot.lane.b32.xlu1 %v4959_v6, %s4665_s21 }
  0x4d   : > { %s5507_s30 = scalar_lea.vmem %s5506_s20, %s4853_s19  ;;  %4245 = vmatprep.mubr.msk.bf16.mxu1 %vm4664_vm2, %v4663_v4  ;;  %s5515_s20 = scalar_lea.vmem %s5429_s11, %s4853_s19 }
  0x4e   : > { %v1131_v7 = vld [vmem:[%s5507_s30] sm:$0xf]  ;;  %s5510_s25 = scalar_lea.vmem %s5509_s1, %s4853_s19 }
  0x4f   : > { %v4969_v8 = vsel %vm1151_vm1, %v1131_v7, 0  ;;  %v1133_v20 = vld [vmem:[%s5510_s25] sm:$0xf]  ;;  %s5517_s25 = sld [smem:[#allocation22_spill]] }
  0x50   : > { %4226 = vmatpush3.bf16.msra.mxu0 %v4969_v8  ;;  %v4995_v21 = vsel %vm1151_vm1, %v1133_v20, 0  ;;  %v5004_v22 = vld [vmem:[%s5508_s8] sm:$0xff]  ;;  %s5512_s29 = scalar_lea.vmem %s5511_s18, %s4829_s0  ;;  %s5527_s8 = sld [smem:[#allocation26_spill]] }
  0x51   : > { %4237 = vmatprep.subr.bf16.mxu0 %v4663_v4 }
  0x53   : > { %4228 = vmatmul.mubr.msk.bf16.vlgmr.msra.gmra.mrb[0].mxu0 %vm1147_vm3, %v4959_v6 }
  0x54   : > { %4239 = vmatprep.mubr.msk.bf16.mxu0 %vm4664_vm2, %v4663_v4  ;;  %4238 = vmatpush3.bf16.msra.mxu0 %v4995_v21 }
  0x55   : > { %4249 = vmatprep.subr.bf16.mxu0 %v4663_v4  ;;  %s5518_s7 = scalar_lea.vmem %s5517_s25, %s4829_s0  ;;  %s5529_s25 = sld [smem:[#allocation27_spill]] }
  0x5b   : > { %4240 = vmatmul.mubr.msk.bf16.vlgmr.msra.gmra.mrb[4].mxu0 %vm1147_vm3, %v4959_v6 }
  0x5c   : > { %4251 = vmatprep.mubr.msk.bf16.mxu0 %vm4664_vm2, %v4663_v4 }
  0xbe   : > { %v1438_v46 = vpop.permute.xlu1 %1437 }
 0x11f   : > { %v1232_v9 = vpop.f32.mrb[0].mxu1 }
 0x120   : > { %v1282_v10 = vpack.c.bf16 %v1232_v9, %v1232_v9  ;;  %v4235_v11 = vpop.f32.mrb[1].mxu1 }
 0x121   : > { %v1235_v13 = vpop.f32.mrb[2].mxu1 }
 0x122   : > { %v1287_v15 = vsel %vm1147_vm3, %v1282_v10, 0  ;;  %v4236_v16 = vpop.f32.mrb[3].mxu1 }
 0x123   : > { %4244 = vmatpush3.bf16.xpose.msra.mxu1 %v1287_v15 }
 0x124   : > { %4255 = vmatprep.subr.bf16.mxu1 %v4663_v4 }
 0x126   : > { %v1189_v12 = vpop.f32.mrb[0].mxu0 }
 0x127   : > { %v4229_v14 = vpop.f32.mrb[1].mxu0  ;;  %v1281_v19 = vpack.c.bf16 %v1189_v12, %v1189_v12 }
 0x128   : > { %v1192_v17 = vpop.f32.mrb[2].mxu0 }
 0x129   : > { %v4230_v18 = vpop.f32.mrb[3].mxu0 }
 0x12a   : > { %4246 = vmatmul.mubr.msk.bf16.vlgmr.msra.gmra.mrb[4].mxu1 %vm1147_vm3, %v1281_v19 }
 0x12b   : > { %4257 = vmatprep.mubr.msk.bf16.mxu1 %vm4664_vm2, %v4663_v4  ;;  %4256 = vmatpush3.bf16.msra.mxu1 %v1393_v41 }
 0x12c   : > { %4267 = vmatprep.subr.bf16.mxu1 %v4663_v4 }
 0x12e   : > { %v1275_v34 = vpop.f32.mrb[4].mxu0 }
 0x12f   : > { %v4241_v35 = vpop.f32.mrb[5].mxu0  ;;  %v1341_v38 = vpack.c.bf16 %v1275_v34, %v1275_v34 }
 0x130   : > { %v1278_v36 = vpop.f32.mrb[6].mxu0 }
 0x131   : > { %v4242_v37 = vpop.f32.mrb[7].mxu0  ;;  %v1346_v39 = vsel %vm1151_vm1, %v1341_v38, 0 }
 0x132   : > { %4250 = vmatpush3.bf16.msra.mxu0 %v1346_v39 }
 0x133   : > { %4261 = vmatprep.subr.bf16.mxu0 %v4663_v4 }
 0x1fd   : > { %v1323_v23 = vpop.f32.mrb[4].mxu1 }
 0x1fe   : > { %v1324_v24 = vadd.f32 %v1323_v23, %v5004_v22  ;;  %v4247_v25 = vpop.f32.mrb[5].mxu1 }
 0x1ff   : > { %v1326_v26 = vpop.f32.mrb[6].mxu1 }
 0x200   : > { %v4248_v27 = vpop.f32.mrb[7].mxu1  ;;  %v1329_v28 = vsel %vm1147_vm3, %v1324_v24, -inf }
 0x201   : > { %1330 = vmax.xlane.f32.xlu0 %v1329_v28  ;;  %v1135_v27 = vld [vmem:[%s4871_s24 + $0x4] sm:$0xf] }
 0x202   : > { %v1674_v28 = vsel %vm1151_vm1, %v1135_v27, 0 }
 0x28e   : > { %v1331_v29 = vpop.xlane.xlu0 %1330 }
 0x28f   : > { %v1332_v30 = vsub.f32 %v1324_v24, %v1331_v29 }
 0x291   : > { %v1333_v31 = vmul.f32 1.442695, %v1332_v30 }
 0x293   : > { %4585 = vpow2.f32 %v1333_v31 }
 0x29d   : > { %v4586_v32 = vpop.eup %4585 }
 0x29e   : > { %v1335_v33 = vsel %vm1147_vm3, %v4586_v32, 0.0 }
 0x29f   : > { %1336 = vadd.xlane.f32.xlu0 %v1335_v33 }
 0x32c   : > { %v1337_v42 = vpop.xlane.xlu0 %1336 }
 0x32d   : > { %4587 = vrcp.f32 %v1337_v42 }
 0x337   : > { %v4588_v43 = vpop.eup %4587 }
 0x338   : > { %v1339_v44 = vmul.f32 %v4588_v43, %v4586_v32 }
 0x33a   : > { %v1340_v45 = vpack.c.bf16 %v1339_v44, %v1339_v44 }
 0x33c   : > { %4252 = vmatmul.mubr.msk.bf16.vlgmr.msra.gmra.mrb[8].mxu0 %vm1147_vm3, %v1340_v45 }
 0x33d   : > { %4262 = vmatpush3.bf16.msra.mxu0 %v4969_v8  ;;  %4263 = vmatprep.mubr.msk.bf16.mxu0 %vm4664_vm2, %v4663_v4 }
 0x33e   : > { %4273 = vmatprep.subr.bf16.mxu0 %v4663_v4 }
 0x344   : > { %4264 = vmatmul.mubr.msk.bf16.vlgmr.msra.gmra.mrb[12].mxu0 %vm1147_vm3, %v1438_v46 }
 0x345   : > { %4274 = vmatpush3.bf16.msra.mxu0 %v4995_v21  ;;  %4275 = vmatprep.mubr.msk.bf16.mxu0 %vm4664_vm2, %v4663_v4 }
 0x346   : > { %4285 = vmatprep.subr.bf16.mxu0 %v4663_v4 }
 0x34c   : > { %4276 = vmatmul.mubr.msk.bf16.vlgmr.msra.gmra.mrb[16].mxu0 %vm1147_vm3, %v1438_v46 }
 0x34d   : > { %4287 = vmatprep.mubr.msk.bf16.mxu0 %vm4664_vm2, %v4663_v4 }
 0x40f   : > { %v1382_v47 = vpop.f32.mrb[8].mxu0 }
 0x410   : > { %v1388_v48 = vpack.c.bf16 %v1382_v47, %v1382_v47  ;;  %v4253_v49 = vpop.f32.mrb[9].mxu0 }
 0x411   : > { %v1385_v50 = vpop.f32.mrb[10].mxu0  ;;  %v4045_v49 = vld [vmem:[%s5512_s29] ss:$0 sm:$0xff]  ;;  %s5519_s29 = sld [smem:[#allocation23_spill]] }
 0x412   : > { %v4254_v51 = vpop.f32.mrb[11].mxu0  ;;  %4258 = vmatmul.mubr.msk.bf16.vlgmr.msra.gmra.mrb[8].mxu1 %vm1147_vm3, %v1388_v48 }
 0x413   : > { %4268 = vmatpush3.bf16.msra.mxu1 %v4953_v5  ;;  %4269 = vmatprep.mubr.msk.bf16.mxu1 %vm4664_vm2, %v4663_v4 }
 0x414   : > { %4279 = vmatprep.subr.bf16.mxu1 %v4663_v4 }
 0x417   : > { %v1476_v52 = vpop.f32.mrb[12].mxu0 }
 0x418   : > { %v4265_v53 = vpop.f32.mrb[13].mxu0  ;;  %v1562_v13 = vpack.c.bf16 %v1476_v52, %v1476_v52 }
 0x419   : > { %v1479_v54 = vpop.f32.mrb[14].mxu0 }
 0x41a   : > { %4270 = vmatmul.mubr.msk.bf16.vlgmr.msra.gmra.mrb[12].mxu1 %vm1147_vm3, %v1438_v46  ;;  %v4266_v55 = vpop.f32.mrb[15].mxu0 }
 0x41b   : > { %4281 = vmatprep.mubr.msk.bf16.mxu1 %vm4664_vm2, %v4663_v4 }
 0x41f   : > { %v1556_v56 = vpop.f32.mrb[16].mxu0 }
 0x420   : > { %v1622_v57 = vpack.c.bf16 %v1556_v56, %v1556_v56  ;;  %v4277_v58 = vpop.f32.mrb[17].mxu0 }
 0x421   : > { %v1559_v59 = vpop.f32.mrb[18].mxu0 }
 0x422   : > { %v1627_v60 = vsel %vm1151_vm1, %v1622_v57, 0  ;;  %v4278_v61 = vpop.f32.mrb[19].mxu0 }
 0x423   : > { %4286 = vmatpush3.bf16.msra.mxu0 %v1627_v60 }
 0x424   : > { %4297 = vmatprep.subr.bf16.mxu0 %v4663_v4 }
 0x4e5   : > { %v5039_v62 = vpop.f32.mrb[8].mxu1 }
 0x4e6   : > { %v4259_v63 = vpop.f32.mrb[9].mxu1  ;;  %v1435_v50 = vadd.f32 %v4045_v49, %v5039_v62 }
 0x4e7   : > { %v1432_v0 = vpop.f32.mrb[10].mxu1 }
 0x4e8   : > { %v4260_v1 = vpop.f32.mrb[11].mxu1 }
 0x4ed   : > { %v1516_v2 = vpop.f32.mrb[12].mxu1 }
 0x4ee   : > { %v1563_v7 = vpack.c.bf16 %v1516_v2, %v1516_v2  ;;  %v4271_v9 = vpop.f32.mrb[13].mxu1 }
 0x4ef   : > { %v1519_v10 = vpop.f32.mrb[14].mxu1 }
 0x4f0   : > { %v1568_v11 = vsel %vm1147_vm3, %v1563_v7, 0  ;;  %v4272_v12 = vpop.f32.mrb[15].mxu1 }
 0x4f1   : > { %4280 = vmatpush3.bf16.xpose.msra.mxu1 %v1568_v11 }
 0x4f2   : > { %4291 = vmatprep.subr.bf16.mxu1 %v4663_v4 }
 0x4f8   : > { %4282 = vmatmul.mubr.msk.bf16.vlgmr.msra.gmra.mrb[16].mxu1 %vm1147_vm3, %v1562_v13 }
 0x4f9   : > { %4293 = vmatprep.mubr.msk.bf16.mxu1 %vm4664_vm2, %v4663_v4  ;;  %4292 = vmatpush3.bf16.msra.mxu1 %v1674_v28 }
 0x4fa   : > { %4303 = vmatprep.subr.bf16.mxu1 %v4663_v4 }
 0x5cb   : > { %v1604_v14 = vpop.f32.mrb[16].mxu1 }
 0x5cc   : > { %v1605_v15 = vadd.f32 %v1604_v14, %v5004_v22  ;;  %v4283_v16 = vpop.f32.mrb[17].mxu1 }
 0x5cd   : > { %v1607_v17 = vpop.f32.mrb[18].mxu1 }
 0x5ce   : > { %v4284_v18 = vpop.f32.mrb[19].mxu1  ;;  %v1610_v19 = vsel %vm1147_vm3, %v1605_v15, -inf }
 0x5cf   : > { %1611 = vmax.xlane.f32.xlu1 %v1610_v19 }
 0x65c   : > { %v1612_v20 = vpop.xlane.xlu1 %1611 }
 0x65d   : > { %v1613_v23 = vsub.f32 %v1605_v15, %v1612_v20  ;;  %v1136_v15 = vld [vmem:[%s4871_s24 + $0x8] sm:$0xf] }
 0x65e   : > { %v1954_v16 = vsel %vm1151_vm1, %v1136_v15, 0 }
 0x65f   : > { %v1614_v24 = vmul.f32 1.442695, %v1613_v23 }
 0x661   : > { %4589 = vpow2.f32 %v1614_v24 }
 0x66b   : > { %v4590_v25 = vpop.eup %4589 }
 0x66c   : > { %v1616_v26 = vsel %vm1147_vm3, %v4590_v25, 0.0 }
 0x66d   : > { %1617 = vadd.xlane.f32.xlu0 %v1616_v26 }
 0x683   : > { %1717 = vrot.lane.b32.xlu0 %v4959_v6, %s4666_s28 }
 0x6fa   : > { %v1618_v29 = vpop.xlane.xlu0 %1617 }
 0x6fb   : > { %4591 = vrcp.f32 %v1618_v29 }
 0x6fe   : > { %v1718_v33 = vpop.permute.xlu0 %1717 }
 0x705   : > { %v4592_v30 = vpop.eup %4591 }
 0x706   : > { %v1620_v31 = vmul.f32 %v4592_v30, %v4590_v25 }
 0x708   : > { %v1621_v32 = vpack.c.bf16 %v1620_v31, %v1620_v31 }
 0x70a   : > { %4288 = vmatmul.mubr.msk.bf16.vlgmr.msra.gmra.mrb[20].mxu0 %vm1147_vm3, %v1621_v32 }
 0x70b   : > { %4298 = vmatpush3.bf16.msra.mxu0 %v4969_v8  ;;  %4299 = vmatprep.mubr.msk.bf16.mxu0 %vm4664_vm2, %v4663_v4 }
 0x70c   : > { %4309 = vmatprep.subr.bf16.mxu0 %v4663_v4 }
 0x712   : > { %4300 = vmatmul.mubr.msk.bf16.vlgmr.msra.gmra.mrb[24].mxu0 %vm1147_vm3, %v1718_v33 }
 0x713   : > { %4310 = vmatpush3.bf16.msra.mxu0 %v4995_v21  ;;  %4311 = vmatprep.mubr.msk.bf16.mxu0 %vm4664_vm2, %v4663_v4 }
 0x714   : > { %4321 = vmatprep.subr.bf16.mxu0 %v4663_v4 }
 0x71a   : > { %4312 = vmatmul.mubr.msk.bf16.vlgmr.msra.gmra.mrb[28].mxu0 %vm1147_vm3, %v1718_v33 }
 0x71b   : > { %4323 = vmatprep.mubr.msk.bf16.mxu0 %vm4664_vm2, %v4663_v4 }
 0x7dd   : > { %v1663_v34 = vpop.f32.mrb[20].mxu0 }
 0x7de   : > { %v1669_v35 = vpack.c.bf16 %v1663_v34, %v1663_v34  ;;  %v4289_v36 = vpop.f32.mrb[21].mxu0 }
 0x7df   : > { %v1666_v37 = vpop.f32.mrb[22].mxu0 }
 0x7e0   : > { %v4290_v38 = vpop.f32.mrb[23].mxu0  ;;  %4294 = vmatmul.mubr.msk.bf16.vlgmr.msra.gmra.mrb[20].mxu1 %vm1147_vm3, %v1669_v35 }
 0x7e1   : > { %4304 = vmatpush3.bf16.msra.mxu1 %v4953_v5  ;;  %4305 = vmatprep.mubr.msk.bf16.mxu1 %vm4664_vm2, %v4663_v4 }
 0x7e2   : > { %4315 = vmatprep.subr.bf16.mxu1 %v4663_v4 }
 0x7e5   : > { %v1756_v39 = vpop.f32.mrb[24].mxu0 }
 0x7e6   : > { %v4301_v40 = vpop.f32.mrb[25].mxu0  ;;  %v1842_v63 = vpack.c.bf16 %v1756_v39, %v1756_v39 }
 0x7e7   : > { %v1759_v41 = vpop.f32.mrb[26].mxu0 }
 0x7e8   : > { %4306 = vmatmul.mubr.msk.bf16.vlgmr.msra.gmra.mrb[24].mxu1 %vm1147_vm3, %v1718_v33  ;;  %v4302_v42 = vpop.f32.mrb[27].mxu0 }
 0x7e9   : > { %4317 = vmatprep.mubr.msk.bf16.mxu1 %vm4664_vm2, %v4663_v4 }
 0x7ed   : > { %v1836_v43 = vpop.f32.mrb[28].mxu0 }
 0x7ee   : > { %v1902_v44 = vpack.c.bf16 %v1836_v43, %v1836_v43  ;;  %v4313_v45 = vpop.f32.mrb[29].mxu0 }
 0x7ef   : > { %v1839_v46 = vpop.f32.mrb[30].mxu0 }
 0x7f0   : > { %v1907_v47 = vsel %vm1151_vm1, %v1902_v44, 0  ;;  %v4314_v48 = vpop.f32.mrb[31].mxu0 }
 0x7f1   : > { %4322 = vmatpush3.bf16.msra.mxu0 %v1907_v47 }
 0x7f2   : > { %4333 = vmatprep.subr.bf16.mxu0 %v4663_v4 }
 0x8b3   : > { %v1710_v51 = vpop.f32.mrb[20].mxu1 }
 0x8b4   : > { %v5083_v52 = vadd.f32 %v1710_v51, %v1435_v50  ;;  %v4295_v53 = vpop.f32.mrb[21].mxu1 }
 0x8b5   : > { %v1713_v54 = vpop.f32.mrb[22].mxu1 }
 0x8b6   : > { %v4296_v55 = vpop.f32.mrb[23].mxu1 }
 0x8bb   : > { %v1796_v56 = vpop.f32.mrb[24].mxu1 }
 0x8bc   : > { %v1843_v57 = vpack.c.bf16 %v1796_v56, %v1796_v56  ;;  %v4307_v58 = vpop.f32.mrb[25].mxu1 }
 0x8bd   : > { %v1799_v59 = vpop.f32.mrb[26].mxu1  ;;  %v1137_v58 = vld [vmem:[%s4871_s24 + $0xc] sm:$0xf]  ;;  %s5513_s24 = sld [smem:[#allocation9_spill]] }
 0x8be   : > { %v1848_v60 = vsel %vm1147_vm3, %v1843_v57, 0  ;;  %v4308_v61 = vpop.f32.mrb[27].mxu1  ;;  %v2234_v59 = vsel %vm1151_vm1, %v1137_v58, 0 }
 0x8bf   : > { %4316 = vmatpush3.bf16.xpose.msra.mxu1 %v1848_v60 }
 0x8c0   : > { %4327 = vmatprep.subr.bf16.mxu1 %v4663_v4 }
 0x8c6   : > { %4318 = vmatmul.mubr.msk.bf16.vlgmr.msra.gmra.mrb[28].mxu1 %vm1147_vm3, %v1842_v63 }
 0x8c7   : > { %4329 = vmatprep.mubr.msk.bf16.mxu1 %vm4664_vm2, %v4663_v4  ;;  %4328 = vmatpush3.bf16.msra.mxu1 %v1954_v16 }
 0x8c8   : > { %4339 = vmatprep.subr.bf16.mxu1 %v4663_v4 }
 0x999   : > { %v1884_v62 = vpop.f32.mrb[28].mxu1 }
 0x99a   : > { %v1885_v0 = vadd.f32 %v1884_v62, %v5004_v22  ;;  %v4319_v1 = vpop.f32.mrb[29].mxu1 }
 0x99b   : > { %v1887_v2 = vpop.f32.mrb[30].mxu1 }
 0x99c   : > { %v4320_v7 = vpop.f32.mrb[31].mxu1  ;;  %v1890_v9 = vsel %vm1147_vm3, %v1885_v0, -inf }
 0x99d   : > { %1891 = vmax.xlane.f32.xlu0 %v1890_v9 }
 0xa2a   : > { %v1892_v10 = vpop.xlane.xlu0 %1891 }
 0xa2b   : > { %v1893_v11 = vsub.f32 %v1885_v0, %v1892_v10 }
 0xa2d   : > { %v1894_v12 = vmul.f32 1.442695, %v1893_v11 }
 0xa2f   : > { %4593 = vpow2.f32 %v1894_v12 }
 0xa39   : > { %v4594_v13 = vpop.eup %4593 }
 0xa3a   : > { %v1896_v14 = vsel %vm1147_vm3, %v4594_v13, 0.0 }
 0xa3b   : > { %1897 = vadd.xlane.f32.xlu1 %v1896_v14 }
 0xa4c   : > { %1997 = vrot.lane.b32.xlu1 %v4959_v6, %s4667_s5 }
 0xac8   : > { %v1898_v17 = vpop.xlane.xlu1 %1897 }
 0xac9   : > { %4595 = vrcp.f32 %v1898_v17 }
 0xacc   : > { %v1998_v6 = vpop.permute.xlu1 %1997 }
 0xad3   : > { %v4596_v18 = vpop.eup %4595 }
 0xad4   : > { %v1900_v19 = vmul.f32 %v4596_v18, %v4594_v13 }
 0xad6   : > { %v1901_v20 = vpack.c.bf16 %v1900_v19, %v1900_v19 }
 0xad8   : > { %4324 = vmatmul.mubr.msk.bf16.vlgmr.msra.gmra.mrb[32].mxu0 %vm1147_vm3, %v1901_v20 }
 0xad9   : > { %4334 = vmatpush3.bf16.msra.mxu0 %v4969_v8  ;;  %4335 = vmatprep.mubr.msk.bf16.mxu0 %vm4664_vm2, %v4663_v4 }
 0xada   : > { %4345 = vmatprep.subr.bf16.mxu0 %v4663_v4 }
 0xae0   : > { %4336 = vmatmul.mubr.msk.bf16.vlgmr.msra.gmra.mrb[36].mxu0 %vm1147_vm3, %v1998_v6 }
 0xae1   : > { %4346 = vmatpush3.bf16.msra.mxu0 %v4995_v21  ;;  %4347 = vmatprep.mubr.msk.bf16.mxu0 %vm4664_vm2, %v4663_v4 }
 0xae2   : > { %4357 = vmatprep.subr.bf16.mxu0 %v4663_v4 }
 0xae8   : > { %4348 = vmatmul.mubr.msk.bf16.vlgmr.msra.gmra.mrb[40].mxu0 %vm1147_vm3, %v1998_v6 }
 0xae9   : > { %4359 = vmatprep.mubr.msk.bf16.mxu0 %vm4664_vm2, %v4663_v4 }
 0xbab   : > { %v1943_v8 = vpop.f32.mrb[32].mxu0 }
 0xbac   : > { %v1949_v23 = vpack.c.bf16 %v1943_v8, %v1943_v8  ;;  %v4325_v24 = vpop.f32.mrb[33].mxu0 }
 0xbad   : > { %v1946_v25 = vpop.f32.mrb[34].mxu0 }
 0xbae   : > { %v4326_v26 = vpop.f32.mrb[35].mxu0  ;;  %4330 = vmatmul.mubr.msk.bf16.vlgmr.msra.gmra.mrb[32].mxu1 %vm1147_vm3, %v1949_v23  ;;  %v2310_v23 = vld [vmem:[%s5515_s20] sm:$0xf] }
 0xbaf   : > { %4340 = vmatpush3.bf16.msra.mxu1 %v4953_v5  ;;  %4341 = vmatprep.mubr.msk.bf16.mxu1 %vm4664_vm2, %v4663_v4  ;;  %v5165_v24 = vsel %vm1151_vm1, %v2310_v23, 0 }
 0xbb0   : > { %4351 = vmatprep.subr.bf16.mxu1 %v4663_v4 }
 0xbb3   : > { %v2036_v21 = vpop.f32.mrb[36].mxu0 }
 0xbb4   : > { %v4337_v27 = vpop.f32.mrb[37].mxu0  ;;  %v2122_v46 = vpack.c.bf16 %v2036_v21, %v2036_v21 }
 0xbb5   : > { %v2039_v28 = vpop.f32.mrb[38].mxu0 }
 0xbb6   : > { %4342 = vmatmul.mubr.msk.bf16.vlgmr.msra.gmra.mrb[36].mxu1 %vm1147_vm3, %v1998_v6  ;;  %v4338_v29 = vpop.f32.mrb[39].mxu0  ;;  %v2311_v6 = vld [vmem:[%s5514_s23] sm:$0xf]  ;;  %s5521_s23 = sld [smem:[#allocation16_spill]] }
 0xbb7   : > { %4353 = vmatprep.mubr.msk.bf16.mxu1 %vm4664_vm2, %v4663_v4  ;;  %v5148_v8 = vsel %vm1151_vm1, %v2311_v6, 0  ;;  %v4070_v28 = vld [vmem:[%s5516_s3] ss:$0 sm:$0xff]  ;;  %s5528_s3 = scalar_lea.vmem %s5527_s8, %s4829_s0 }
 0xbbb   : > { %v2116_v30 = vpop.f32.mrb[40].mxu0 }
 0xbbc   : > { %v2182_v31 = vpack.c.bf16 %v2116_v30, %v2116_v30  ;;  %v4349_v32 = vpop.f32.mrb[41].mxu0  ;;  %v4071_v30 = vld [vmem:[%s5518_s7] ss:$0 sm:$0xff]  ;;  %s5522_s13 = scalar_lea.vmem %s5521_s23, %s5549_s26  ;;  %s5530_s7 = scalar_lea.vmem %s5529_s25, %s4829_s0 }
 0xbbd   : > { %v2119_v33 = vpop.f32.mrb[42].mxu0 }
 0xbbe   : > { %v2187_v5 = vsel %vm1151_vm1, %v2182_v31, 0  ;;  %v4350_v34 = vpop.f32.mrb[43].mxu0 }
 0xbbf   : > { %4358 = vmatpush3.bf16.msra.mxu0 %v2187_v5 }
 0xbc0   : > { %4369 = vmatprep.subr.bf16.mxu0 %v4663_v4 }
 0xc81   : > { %v1990_v35 = vpop.f32.mrb[32].mxu1 }
 0xc82   : > { %v1996_v36 = vadd.f32 %v1990_v35, %v5083_v52  ;;  %v4331_v37 = vpop.f32.mrb[33].mxu1 }
 0xc83   : > { %v1993_v38 = vpop.f32.mrb[34].mxu1 }
 0xc84   : > { %v4332_v39 = vpop.f32.mrb[35].mxu1 }
 0xc89   : > { %v2076_v40 = vpop.f32.mrb[36].mxu1 }
 0xc8a   : > { %v2123_v41 = vpack.c.bf16 %v2076_v40, %v2076_v40  ;;  %v4343_v42 = vpop.f32.mrb[37].mxu1 }
 0xc8b   : > { %v2079_v43 = vpop.f32.mrb[38].mxu1 }
 0xc8c   : > { %v2128_v44 = vsel %vm1147_vm3, %v2123_v41, 0  ;;  %v4344_v45 = vpop.f32.mrb[39].mxu1 }
 0xc8d   : > { %4352 = vmatpush3.bf16.xpose.msra.mxu1 %v2128_v44 }
 0xc8e   : > { %4363 = vmatprep.subr.bf16.mxu1 %v4663_v4 }
 0xc94   : > { %4354 = vmatmul.mubr.msk.bf16.vlgmr.msra.gmra.mrb[40].mxu1 %vm1147_vm3, %v2122_v46  ;;  %v5215_v46 = vld [vmem:[%s5522_s13] ss:$0 sm:$0xff] }
 0xc95   : > { %4365 = vmatprep.mubr.msk.bf16.mxu1 %vm4664_vm2, %v4663_v4  ;;  %4364 = vmatpush3.bf16.msra.mxu1 %v2234_v59 }
 0xc96   : > { %4375 = vmatprep.subr.bf16.mxu1 %v4663_v4 }
 0xd67   : > { %v2164_v47 = vpop.f32.mrb[40].mxu1 }
 0xd68   : > { %v2165_v48 = vadd.f32 %v2164_v47, %v5004_v22  ;;  %v4355_v49 = vpop.f32.mrb[41].mxu1 }
 0xd69   : > { %v2167_v50 = vpop.f32.mrb[42].mxu1 }
 0xd6a   : > { %v4356_v51 = vpop.f32.mrb[43].mxu1  ;;  %v2170_v52 = vsel %vm1147_vm3, %v2165_v48, -inf }
 0xd6b   : > { %2171 = vmax.xlane.f32.xlu1 %v2170_v52 }
 0xdf8   : > { %v2172_v53 = vpop.xlane.xlu1 %2171 }
 0xdf9   : > { %v2173_v54 = vsub.f32 %v2165_v48, %v2172_v53 }
 0xdfb   : > { %v2174_v55 = vmul.f32 1.442695, %v2173_v54 }
 0xdfd   : > { %4597 = vpow2.f32 %v2174_v55 }
 0xe07   : > { %v4598_v56 = vpop.eup %4597 }
 0xe08   : > { %v2176_v57 = vsel %vm1147_vm3, %v4598_v56, 0.0 }
 0xe09   : > { %2177 = vadd.xlane.f32.xlu0 %v2176_v57 }
 0xe96   : > { %v2178_v22 = vpop.xlane.xlu0 %2177 }
 0xe97   : > { %4599 = vrcp.f32 %v2178_v22 }
 0xea1   : > { %v4600_v60 = vpop.eup %4599 }
 0xea2   : > { %v2180_v61 = vmul.f32 %v4600_v60, %v4598_v56 }
 0xea4   : > { %v2181_v63 = vpack.c.bf16 %v2180_v61, %v2180_v61 }
 0xea6   : > { %4360 = vmatmul.mubr.msk.bf16.vlgmr.msra.gmra.mrb[44].mxu0 %vm1147_vm3, %v2181_v63 }
 0xea7   : > { %4371 = vmatprep.mubr.msk.bf16.mxu0 %vm4664_vm2, %v4663_v4  ;;  %4370 = vmatpush3.bf16.msra.mxu0 %v5165_v24 }
 0xea8   : > { %4381 = vmatprep.subr.bf16.mxu0 %v4663_v4 }
 0xf79   : > { %v2223_v62 = vpop.f32.mrb[44].mxu0 }
 0xf7a   : > { %v2229_v0 = vpack.c.bf16 %v2223_v62, %v2223_v62  ;;  %v4361_v1 = vpop.f32.mrb[45].mxu0 }
 0xf7b   : > { %v2226_v2 = vpop.f32.mrb[46].mxu0 }
 0xf7c   : > { %v4362_v7 = vpop.f32.mrb[47].mxu0  ;;  %4366 = vmatmul.mubr.msk.bf16.vlgmr.msra.gmra.mrb[44].mxu1 %vm1147_vm3, %v2229_v0 }
 0xf7d   : > { %4377 = vmatprep.mubr.msk.bf16.mxu1 %vm4664_vm2, %v4663_v4  ;;  %4376 = vmatpush3.bf16.msra.mxu1 %v5148_v8 }
 0xf7e   : > { %4387 = vmatprep.subr.bf16.mxu1 %v4663_v4 }
0x104f   : > { %v2270_v9 = vpop.f32.mrb[44].mxu1 }
0x1050   : > { %v2276_v10 = vadd.f32 %v2270_v9, %v1996_v36  ;;  %v4367_v11 = vpop.f32.mrb[45].mxu1 }
0x1051   : > { %v2273_v12 = vpop.f32.mrb[46].mxu1 }
0x1052   : > { %v4368_v13 = vpop.f32.mrb[47].mxu1  ;;  %v2277_v14 = vadd.f32 %v2276_v10, %v4949_v3  ;;  %v5152_v3 = vld [vmem:[%s5513_s24] sm:$0x1f]   ;;  %s5520_s24 = scalar_lea.vmem %s5519_s29, %s4853_s19  ;;  %s5523_s19 = sld [smem:[#allocation11_spill]] }
0x1053   : > { %4378 = vmatmul.mubr.msk.bf16.vlgmr.msra.gmra.mrb[48].mxu1 %vm1147_vm3, %v5152_v3  ;;  %v2312_v44 = vld [vmem:[%s5520_s24] sm:$0xf]  ;;  %s5531_s29 = sld [smem:[#allocation29_spill]] }
0x1054   : > { %v2281_v15 = vsel %vm2280_vm4, %v2277_v14, 0.0  ;;  %4389 = vmatprep.mubr.msk.bf16.mxu1 %vm4664_vm2, %v4663_v4  ;;  %v5202_v45 = vsel %vm1151_vm1, %v2312_v44, 0 }
0x1055   : > { %2282 = vadd.xlane.f32.xlu0 %v2281_v15 }
0x1058   : > { %v2313_v62 = vld [vmem:[%s5523_s19] sm:$0xf] }
0x1059   : > { %v2588_v0 = vsel %vm1151_vm1, %v2313_v62, 0  ;;  %s5532_s24 = scalar_lea.vmem %s5531_s29, %s4829_s0 }
0x10e2   : > { %v2283_v16 = vpop.xlane.xlu0 %2282 }
0x10e3   : > { %v2285_v17 = vmul.f32 0.03125, %v2283_v16 }
0x10e5   : > { %v2286_v18 = vsub.f32 %v2277_v14, %v2285_v17 }
0x10e7   : > { %v2287_v19 = vmul.f32 %v2286_v18, %v2286_v18 }
0x10e9   : > { %v2288_v20 = vsel %vm2280_vm4, %v2287_v19, 0.0 }
0x10ea   : > { %2289 = vadd.xlane.f32.xlu0 %v2288_v20 }
0x1126   : > { %v2417_v5 = vpop.f32.mrb[48].mxu1 }
0x1127   : > { %v4379_v34 = vpop.f32.mrb[49].mxu1 }
0x1128   : > { %v2420_v35 = vpop.f32.mrb[50].mxu1 }
0x1129   : > { %v2469_v36 = vpack.c.bf16 %v2420_v35, %v2417_v5  ;;  %v4380_v37 = vpop.f32.mrb[51].mxu1 }
0x112b   : > { %v2480_v38 = vsel %vm1147_vm3, %v2469_v36, 0 }
0x112c   : > { %4388 = vmatpush3.bf16.xpose.msra.mxu1 %v2480_v38 }
0x112d   : > { %4399 = vmatprep.subr.bf16.mxu1 %v4663_v4 }
0x1177   : > { %v2290_v25 = vpop.xlane.xlu0 %2289 }
0x1178   : > { %v2291_v26 = vmul.f32 0.03125, %v2290_v25 }
0x117a   : > { %v2292_v21 = vadd.f32 1e-05, %v2291_v26 }
0x117c   : > { %4601 = vrsqrt.f32 %v2292_v21 }
0x1186   : > { %v4602_v27 = vpop.eup %4601 }
0x1187   : > { %v2294_v29 = vmul.f32 %v4602_v27, %v2286_v18 }
0x1189   : > { %v2301_v31 = vmul.f32 %v4070_v28, %v2294_v29 }
0x118b   : > { %v5179_v32 = vadd.f32 %v4071_v30, %v2301_v31 }
0x118d   : > { %v5183_v33 = vpack.c.bf16 %v5179_v32, %v5179_v32 }
0x118f   : > { %2632 = vrot.lane.b32.xlu1 %v5183_v33, %s4665_s21  ;;  %4372 = vmatmul.mubr.msk.bf16.vlgmr.msra.gmra.mrb[48].mxu0 %vm1147_vm3, %v5183_v33 }
0x1190   : > { %4383 = vmatprep.mubr.msk.bf16.mxu0 %vm4664_vm2, %v4663_v4  ;;  %4382 = vmatpush3.bf16.msra.mxu0 %v5202_v45 }
0x1191   : > { %4393 = vmatprep.subr.bf16.mxu0 %v4663_v4 }
0x1197   : > { %4384 = vmatmul.mubr.msk.bf16.vlgmr.msra.gmra.mrb[52].mxu0 %vm1147_vm3, %v5152_v3 }
0x1198   : > { %4395 = vmatprep.mubr.msk.bf16.mxu0 %vm4664_vm2, %v4663_v4 }
0x1201   : > { %v2633_v10 = vpop.permute.xlu1 %2632 }
0x1262   : > { %v2366_v39 = vpop.f32.mrb[48].mxu0 }
0x1263   : > { %v2468_v40 = vpack.c.bf16 %v2366_v39, %v2366_v39  ;;  %v4373_v41 = vpop.f32.mrb[49].mxu0 }
0x1264   : > { %v2369_v42 = vpop.f32.mrb[50].mxu0 }
0x1265   : > { %v4374_v43 = vpop.f32.mrb[51].mxu0  ;;  %4390 = vmatmul.mubr.msk.bf16.vlgmr.msra.gmra.mrb[52].mxu1 %vm1147_vm3, %v2468_v40 }
0x1266   : > { %4401 = vmatprep.mubr.msk.bf16.mxu1 %vm4664_vm2, %v4663_v4  ;;  %4400 = vmatpush3.bf16.msra.mxu1 %v2588_v0 }
0x1267   : > { %4411 = vmatprep.subr.bf16.mxu1 %v4663_v4 }
0x126a   : > { %v2461_v58 = vpop.f32.mrb[52].mxu0 }
0x126b   : > { %v4385_v59 = vpop.f32.mrb[53].mxu0 }
0x126c   : > { %v2464_v22 = vpop.f32.mrb[54].mxu0 }
0x126d   : > { %v4386_v60 = vpop.f32.mrb[55].mxu0  ;;  %v2535_v61 = vpack.c.bf16 %v2464_v22, %v2461_v58 }
0x126f   : > { %v2541_v63 = vsel %vm2539_vm6, %v2535_v61, 0 }
0x1270   : > { %4394 = vmatpush3.bf16.msra.mxu0 %v2541_v63 }
0x1271   : > { %4405 = vmatprep.subr.bf16.mxu0 %v4663_v4 }
0x1338   : > { %v2516_v47 = vpop.f32.mrb[52].mxu1 }
0x1339   : > { %v2517_v48 = vadd.f32 %v5215_v46, %v2516_v47  ;;  %v4391_v49 = vpop.f32.mrb[53].mxu1 }
0x133a   : > { %v2519_v50 = vpop.f32.mrb[54].mxu1 }
0x133b   : > { %v4392_v51 = vpop.f32.mrb[55].mxu1  ;;  %v2523_v52 = vsel %vm2522_vm5, %v2517_v48, -inf }
0x133c   : > { %2524 = vmax.xlane.f32.xlu0 %v2523_v52 }
0x13c9   : > { %v2525_v53 = vpop.xlane.xlu0 %2524 }
0x13ca   : > { %v2526_v54 = vsub.f32 %v2517_v48, %v2525_v53  ;;  %v2314_v53 = vld [vmem:[%s5523_s19 + $0x4] sm:$0xf] }
0x13cc   : > { %v2527_v55 = vmul.f32 1.442695, %v2526_v54  ;;  %v2876_v54 = vsel %vm1151_vm1, %v2314_v53, 0 }
0x13ce   : > { %4603 = vpow2.f32 %v2527_v55 }
0x13d8   : > { %v4604_v56 = vpop.eup %4603 }
0x13d9   : > { %v2529_v57 = vsel %vm2522_vm5, %v4604_v56, 0.0 }
0x13da   : > { %2530 = vadd.xlane.f32.xlu0 %v2529_v57 }
0x13f0   : > { %2677 = vrot.lane.b32.xlu0 %v5152_v3, %s4665_s21 }
0x1467   : > { %v2531_v1 = vpop.xlane.xlu0 %2530 }
0x1468   : > { %4605 = vrcp.f32 %v2531_v1 }
0x146b   : > { %v2678_v11 = vpop.permute.xlu0 %2677 }
0x1472   : > { %v4606_v2 = vpop.eup %4605 }
0x1473   : > { %v2533_v7 = vmul.f32 %v4606_v2, %v4604_v56 }
0x1475   : > { %v2534_v9 = vpack.c.bf16 %v2533_v7, %v2533_v7 }
0x1477   : > { %4396 = vmatmul.mubr.msk.bf16.vlgmr.msra.gmra.mrb[56].mxu0 %vm2522_vm5, %v2534_v9 }
0x1478   : > { %4406 = vmatpush3.bf16.msra.mxu0 %v5165_v24  ;;  %4407 = vmatprep.mubr.msk.bf16.mxu0 %vm4664_vm2, %v4663_v4 }
0x1479   : > { %4417 = vmatprep.subr.bf16.mxu0 %v4663_v4 }
0x147f   : > { %4408 = vmatmul.mubr.msk.bf16.vlgmr.msra.gmra.mrb[60].mxu0 %vm1147_vm3, %v2633_v10 }
0x1480   : > { %4418 = vmatpush3.bf16.msra.mxu0 %v5202_v45  ;;  %4419 = vmatprep.mubr.msk.bf16.mxu0 %vm4664_vm2, %v4663_v4 }
0x1481   : > { %4429 = vmatprep.subr.bf16.mxu0 %v4663_v4 }
0x1487   : > { %4420 = vmatmul.mubr.msk.bf16.vlgmr.msra.gmra.mrb[64].mxu0 %vm1147_vm3, %v2678_v11 }
0x1488   : > { %4431 = vmatprep.mubr.msk.bf16.mxu0 %vm4664_vm2, %v4663_v4 }
0x154a   : > { %v2577_v12 = vpop.f32.mrb[56].mxu0 }
0x154b   : > { %v2583_v13 = vpack.c.bf16 %v2577_v12, %v2577_v12  ;;  %v4397_v14 = vpop.f32.mrb[57].mxu0 }
0x154c   : > { %v2580_v15 = vpop.f32.mrb[58].mxu0 }
0x154d   : > { %v4398_v16 = vpop.f32.mrb[59].mxu0  ;;  %4402 = vmatmul.mubr.msk.bf16.vlgmr.msra.gmra.mrb[56].mxu1 %vm1147_vm3, %v2583_v13 }
0x154e   : > { %4412 = vmatpush3.bf16.msra.mxu1 %v5148_v8  ;;  %4413 = vmatprep.mubr.msk.bf16.mxu1 %vm4664_vm2, %v4663_v4 }
0x154f   : > { %4423 = vmatprep.subr.bf16.mxu1 %v4663_v4 }
0x1552   : > { %v2671_v17 = vpop.f32.mrb[60].mxu0 }
0x1553   : > { %v4409_v18 = vpop.f32.mrb[61].mxu0  ;;  %v2764_v39 = vpack.c.bf16 %v2671_v17, %v2671_v17 }
0x1554   : > { %v2674_v19 = vpop.f32.mrb[62].mxu0 }
0x1555   : > { %v4410_v20 = vpop.f32.mrb[63].mxu0  ;;  %4414 = vmatmul.mubr.msk.bf16.vlgmr.msra.gmra.mrb[60].mxu1 %vm1147_vm3, %v2678_v11 }
0x1556   : > { %4425 = vmatprep.mubr.msk.bf16.mxu1 %vm4664_vm2, %v4663_v4 }
0x155a   : > { %v2757_v6 = vpop.f32.mrb[64].mxu0 }
0x155b   : > { %v4421_v23 = vpop.f32.mrb[65].mxu0 }
0x155c   : > { %v2760_v25 = vpop.f32.mrb[66].mxu0 }
0x155d   : > { %v2824_v26 = vpack.c.bf16 %v2760_v25, %v2757_v6  ;;  %v4422_v21 = vpop.f32.mrb[67].mxu0 }
0x155f   : > { %v2829_v27 = vsel %vm2539_vm6, %v2824_v26, 0 }
0x1560   : > { %4430 = vmatpush3.bf16.msra.mxu0 %v2829_v27 }
0x1561   : > { %4441 = vmatprep.subr.bf16.mxu0 %v4663_v4 }
0x1620   : > { %v5250_v28 = vpop.f32.mrb[56].mxu1 }
0x1621   : > { %v4403_v29 = vpop.f32.mrb[57].mxu1 }
0x1622   : > { %v2627_v30 = vpop.f32.mrb[58].mxu1 }
0x1623   : > { %v4404_v31 = vpop.f32.mrb[59].mxu1 }
0x1628   : > { %v2716_v5 = vpop.f32.mrb[60].mxu1 }
0x1629   : > { %v4415_v34 = vpop.f32.mrb[61].mxu1 }
0x162a   : > { %v2719_v35 = vpop.f32.mrb[62].mxu1 }
0x162b   : > { %v2765_v36 = vpack.c.bf16 %v2719_v35, %v2716_v5  ;;  %v4416_v37 = vpop.f32.mrb[63].mxu1 }
0x162d   : > { %v2770_v38 = vsel %vm1147_vm3, %v2765_v36, 0 }
0x162e   : > { %4424 = vmatpush3.bf16.xpose.msra.mxu1 %v2770_v38 }
0x162f   : > { %4435 = vmatprep.subr.bf16.mxu1 %v4663_v4 }
0x1635   : > { %4426 = vmatmul.mubr.msk.bf16.vlgmr.msra.gmra.mrb[64].mxu1 %vm1147_vm3, %v2764_v39 }
0x1636   : > { %4437 = vmatprep.mubr.msk.bf16.mxu1 %vm4664_vm2, %v4663_v4  ;;  %4436 = vmatpush3.bf16.msra.mxu1 %v2876_v54 }
0x1637   : > { %4447 = vmatprep.subr.bf16.mxu1 %v4663_v4 }
0x1708   : > { %v2806_v40 = vpop.f32.mrb[64].mxu1 }
0x1709   : > { %v2807_v41 = vadd.f32 %v5215_v46, %v2806_v40  ;;  %v4427_v42 = vpop.f32.mrb[65].mxu1 }
0x170a   : > { %v2809_v43 = vpop.f32.mrb[66].mxu1 }
0x170b   : > { %v4428_v44 = vpop.f32.mrb[67].mxu1  ;;  %v2812_v47 = vsel %vm2522_vm5, %v2807_v41, -inf  ;;  %v2315_v43 = vld [vmem:[%s5523_s19 + $0x8] sm:$0xf] }
0x170c   : > { %2813 = vmax.xlane.f32.xlu0 %v2812_v47  ;;  %v3163_v44 = vsel %vm1151_vm1, %v2315_v43, 0 }
0x1722   : > { %2964 = vrot.lane.b32.xlu0 %v5152_v3, %s4666_s28 }
0x1799   : > { %v2814_v48 = vpop.xlane.xlu0 %2813 }
0x179a   : > { %v2815_v49 = vsub.f32 %v2807_v41, %v2814_v48 }
0x179c   : > { %v2816_v50 = vmul.f32 1.442695, %v2815_v49 }
0x179d   : > { %v2965_v22 = vpop.permute.xlu0 %2964 }
0x179e   : > { %4607 = vpow2.f32 %v2816_v50 }
0x17a8   : > { %v4608_v51 = vpop.eup %4607 }
0x17a9   : > { %v2818_v52 = vsel %vm2522_vm5, %v4608_v51, 0.0 }
0x17aa   : > { %2819 = vadd.xlane.f32.xlu1 %v2818_v52 }
0x17bb   : > { %2919 = vrot.lane.b32.xlu1 %v5183_v33, %s4666_s28  ;;  %s5524_s28 = sld [smem:[#allocation25_spill]] }
0x17c1   : > { %s5525_s4 = scalar_lea.vmem %s5524_s28, %s4829_s0  ;;  %s5536_s28 = sld [smem:[#allocation3_spill]] }
0x17c2   : > { %v4072_v16 = vld [vmem:[%s5525_s4] ss:$0 sm:$0xff] }
0x17c3   : > { %v2630_v17 = vadd.f32 %v4072_v16, %v5250_v28 }
0x17c7   : > { %p4113_p8 = scmp.ne.s32.totalorder %s5536_s28, 1 }
0x17c8   : > { %vm3711_vm8 = vcmask (!%p4113_p8), 257024  }
0x1837   : > { %v2820_v55 = vpop.xlane.xlu1 %2819 }
0x1838   : > { %4609 = vrcp.f32 %v2820_v55 }
0x183b   : > { %v2920_v59 = vpop.permute.xlu1 %2919 }
0x1842   : > { %v4610_v56 = vpop.eup %4609 }
0x1843   : > { %v2822_v57 = vmul.f32 %v4610_v56, %v4608_v51 }
0x1845   : > { %v2823_v58 = vpack.c.bf16 %v2822_v57, %v2822_v57 }
0x1847   : > { %4432 = vmatmul.mubr.msk.bf16.vlgmr.msra.gmra.mrb[68].mxu0 %vm2522_vm5, %v2823_v58 }
0x1848   : > { %4442 = vmatpush3.bf16.msra.mxu0 %v5165_v24  ;;  %4443 = vmatprep.mubr.msk.bf16.mxu0 %vm4664_vm2, %v4663_v4 }
0x1849   : > { %4453 = vmatprep.subr.bf16.mxu0 %v4663_v4 }
0x184f   : > { %4444 = vmatmul.mubr.msk.bf16.vlgmr.msra.gmra.mrb[72].mxu0 %vm1147_vm3, %v2920_v59 }
0x1850   : > { %4454 = vmatpush3.bf16.msra.mxu0 %v5202_v45  ;;  %4455 = vmatprep.mubr.msk.bf16.mxu0 %vm4664_vm2, %v4663_v4 }
0x1851   : > { %4465 = vmatprep.subr.bf16.mxu0 %v4663_v4 }
0x1857   : > { %4456 = vmatmul.mubr.msk.bf16.vlgmr.msra.gmra.mrb[76].mxu0 %vm1147_vm3, %v2965_v22 }
0x1858   : > { %4467 = vmatprep.mubr.msk.bf16.mxu0 %vm4664_vm2, %v4663_v4 }
0x191a   : > { %v2865_v60 = vpop.f32.mrb[68].mxu0 }
0x191b   : > { %v2871_v61 = vpack.c.bf16 %v2865_v60, %v2865_v60  ;;  %v4433_v63 = vpop.f32.mrb[69].mxu0 }
0x191c   : > { %v2868_v62 = vpop.f32.mrb[70].mxu0 }
0x191d   : > { %v4434_v0 = vpop.f32.mrb[71].mxu0  ;;  %4438 = vmatmul.mubr.msk.bf16.vlgmr.msra.gmra.mrb[68].mxu1 %vm1147_vm3, %v2871_v61 }
0x191e   : > { %4448 = vmatpush3.bf16.msra.mxu1 %v5148_v8  ;;  %4449 = vmatprep.mubr.msk.bf16.mxu1 %vm4664_vm2, %v4663_v4 }
0x191f   : > { %4459 = vmatprep.subr.bf16.mxu1 %v4663_v4 }
0x1922   : > { %v2958_v1 = vpop.f32.mrb[72].mxu0 }
0x1923   : > { %v4445_v2 = vpop.f32.mrb[73].mxu0  ;;  %v3051_v31 = vpack.c.bf16 %v2958_v1, %v2958_v1 }
0x1924   : > { %v2961_v7 = vpop.f32.mrb[74].mxu0 }
0x1925   : > { %v4446_v9 = vpop.f32.mrb[75].mxu0  ;;  %4450 = vmatmul.mubr.msk.bf16.vlgmr.msra.gmra.mrb[72].mxu1 %vm1147_vm3, %v2965_v22 }
0x1926   : > { %4461 = vmatprep.mubr.msk.bf16.mxu1 %vm4664_vm2, %v4663_v4 }
0x192a   : > { %v3044_v10 = vpop.f32.mrb[76].mxu0 }
0x192b   : > { %v4457_v11 = vpop.f32.mrb[77].mxu0 }
0x192c   : > { %v3047_v12 = vpop.f32.mrb[78].mxu0 }
0x192d   : > { %v3111_v13 = vpack.c.bf16 %v3047_v12, %v3044_v10  ;;  %v4458_v14 = vpop.f32.mrb[79].mxu0 }
0x192f   : > { %v3116_v15 = vsel %vm2539_vm6, %v3111_v13, 0 }
0x1930   : > { %4466 = vmatpush3.bf16.msra.mxu0 %v3116_v15 }
0x1931   : > { %4477 = vmatprep.subr.bf16.mxu0 %v4663_v4 }
0x19f0   : > { %v2912_v18 = vpop.f32.mrb[68].mxu1 }
0x19f1   : > { %v5296_v19 = vadd.f32 %v2912_v18, %v2630_v17  ;;  %v4439_v20 = vpop.f32.mrb[69].mxu1 }
0x19f2   : > { %v2915_v6 = vpop.f32.mrb[70].mxu1 }
0x19f3   : > { %v4440_v23 = vpop.f32.mrb[71].mxu1 }
0x19f8   : > { %v3003_v25 = vpop.f32.mrb[72].mxu1 }
0x19f9   : > { %v4451_v26 = vpop.f32.mrb[73].mxu1 }
0x19fa   : > { %v3006_v21 = vpop.f32.mrb[74].mxu1 }
0x19fb   : > { %v3052_v27 = vpack.c.bf16 %v3006_v21, %v3003_v25  ;;  %v4452_v29 = vpop.f32.mrb[75].mxu1 }
0x19fd   : > { %v3057_v30 = vsel %vm1147_vm3, %v3052_v27, 0  ;;  %v2316_v27 = vld [vmem:[%s5523_s19 + $0xc] sm:$0xf] }
0x19fe   : > { %4460 = vmatpush3.bf16.xpose.msra.mxu1 %v3057_v30  ;;  %v3450_v29 = vsel %vm1151_vm1, %v2316_v27, 0  ;;  %v4111_v27 = vld [vmem:[%s1110_s10] ss:$0 sm:$0xff] }
0x19ff   : > { %4471 = vmatprep.subr.bf16.mxu1 %v4663_v4 }
0x1a05   : > { %4462 = vmatmul.mubr.msk.bf16.vlgmr.msra.gmra.mrb[76].mxu1 %vm1147_vm3, %v3051_v31 }
0x1a06   : > { %4473 = vmatprep.mubr.msk.bf16.mxu1 %vm4664_vm2, %v4663_v4  ;;  %4472 = vmatpush3.bf16.msra.mxu1 %v3163_v44 }
0x1a07   : > { %4483 = vmatprep.subr.bf16.mxu1 %v4663_v4 }
0x1ad8   : > { %v3093_v28 = vpop.f32.mrb[76].mxu1 }
0x1ad9   : > { %v3094_v5 = vadd.f32 %v5215_v46, %v3093_v28  ;;  %v4463_v34 = vpop.f32.mrb[77].mxu1 }
0x1ada   : > { %v3096_v35 = vpop.f32.mrb[78].mxu1 }
0x1adb   : > { %v4464_v36 = vpop.f32.mrb[79].mxu1  ;;  %v3099_v37 = vsel %vm2522_vm5, %v3094_v5, -inf }
0x1adc   : > { %3100 = vmax.xlane.f32.xlu0 %v3099_v37 }
0x1af2   : > { %3251 = vrot.lane.b32.xlu0 %v5152_v3, %s4667_s5 }
0x1b69   : > { %v3101_v38 = vpop.xlane.xlu0 %3100 }
0x1b6a   : > { %v3102_v39 = vsub.f32 %v3094_v5, %v3101_v38 }
0x1b6c   : > { %v3103_v40 = vmul.f32 1.442695, %v3102_v39 }
0x1b6d   : > { %v3252_v50 = vpop.permute.xlu0 %3251 }
0x1b6e   : > { %4611 = vpow2.f32 %v3103_v40 }
0x1b78   : > { %v4612_v41 = vpop.eup %4611 }
0x1b79   : > { %v3105_v42 = vsel %vm2522_vm5, %v4612_v41, 0.0 }
0x1b7a   : > { %3106 = vadd.xlane.f32.xlu1 %v3105_v42 }
0x1b8b   : > { %3206 = vrot.lane.b32.xlu1 %v5183_v33, %s4667_s5  ;;  %s5526_s5 = sld [smem:[#allocation12_spill]] }
0x1c07   : > { %v3107_v47 = vpop.xlane.xlu1 %3106 }
0x1c08   : > { %4613 = vrcp.f32 %v3107_v47 }
0x1c0b   : > { %v3207_v33 = vpop.permute.xlu1 %3206 }
0x1c12   : > { %v4614_v3 = vpop.eup %4613 }
0x1c13   : > { %v3109_v48 = vmul.f32 %v4614_v3, %v4612_v41 }
0x1c15   : > { %v3110_v49 = vpack.c.bf16 %v3109_v48, %v3109_v48 }
0x1c17   : > { %4468 = vmatmul.mubr.msk.bf16.vlgmr.msra.gmra.mrb[80].mxu0 %vm2522_vm5, %v3110_v49 }
0x1c18   : > { %4478 = vmatpush3.bf16.msra.mxu0 %v5165_v24  ;;  %4479 = vmatprep.mubr.msk.bf16.mxu0 %vm4664_vm2, %v4663_v4 }
0x1c19   : > { %4489 = vmatprep.subr.bf16.mxu0 %v4663_v4 }
0x1c1f   : > { %4480 = vmatmul.mubr.msk.bf16.vlgmr.msra.gmra.mrb[84].mxu0 %vm1147_vm3, %v3207_v33 }
0x1c20   : > { %4490 = vmatpush3.bf16.msra.mxu0 %v5202_v45  ;;  %4491 = vmatprep.mubr.msk.bf16.mxu0 %vm4664_vm2, %v4663_v4 }
0x1c21   : > { %4501 = vmatprep.subr.bf16.mxu0 %v4663_v4 }
0x1c27   : > { %4492 = vmatmul.mubr.msk.bf16.vlgmr.msra.gmra.mrb[88].mxu0 %vm1147_vm3, %v3252_v50 }
0x1c28   : > { %4503 = vmatprep.mubr.msk.bf16.mxu0 %vm4664_vm2, %v4663_v4 }
0x1cea   : > { %v3152_v24 = vpop.f32.mrb[80].mxu0 }
0x1ceb   : > { %v3158_v51 = vpack.c.bf16 %v3152_v24, %v3152_v24  ;;  %v4469_v52 = vpop.f32.mrb[81].mxu0  ;;  %v4580_v24 = vld [vmem:[%s5526_s5 + $0x8] sm:$0xff]  }
0x1cec   : > { %v3155_v53 = vpop.f32.mrb[82].mxu0 }
0x1ced   : > { %v4470_v54 = vpop.f32.mrb[83].mxu0  ;;  %4474 = vmatmul.mubr.msk.bf16.vlgmr.msra.gmra.mrb[80].mxu1 %vm1147_vm3, %v3158_v51  ;;  %v4582_v51 = vld [vmem:[%s4931_s16 + $0x8] sm:$0xff]  }
0x1cee   : > { %4484 = vmatpush3.bf16.msra.mxu1 %v5148_v8  ;;  %4485 = vmatprep.mubr.msk.bf16.mxu1 %vm4664_vm2, %v4663_v4 }
0x1cef   : > { %4495 = vmatprep.subr.bf16.mxu1 %v4663_v4 }
0x1cf2   : > { %v3245_v45 = vpop.f32.mrb[84].mxu0 }
0x1cf3   : > { %v4481_v55 = vpop.f32.mrb[85].mxu0  ;;  %v3338_v14 = vpack.c.bf16 %v3245_v45, %v3245_v45 }
0x1cf4   : > { %v3248_v56 = vpop.f32.mrb[86].mxu0  ;;  %v4099_v55 = vld [vmem:[%s5528_s3] ss:$0 sm:$0xff] }
0x1cf5   : > { %v4482_v57 = vpop.f32.mrb[87].mxu0  ;;  %4486 = vmatmul.mubr.msk.bf16.vlgmr.msra.gmra.mrb[84].mxu1 %vm1147_vm3, %v3252_v50  ;;  %v4579_v50 = vld [vmem:[%s5526_s5] sm:$0xff]  }
0x1cf6   : > { %4497 = vmatprep.mubr.msk.bf16.mxu1 %vm4664_vm2, %v4663_v4  ;;  %v4100_v57 = vld [vmem:[%s5530_s7] ss:$0 sm:$0xff] }
0x1cfa   : > { %v3331_v58 = vpop.f32.mrb[88].mxu0 }
0x1cfb   : > { %v4493_v59 = vpop.f32.mrb[89].mxu0 }
0x1cfc   : > { %v3334_v22 = vpop.f32.mrb[90].mxu0 }
0x1cfd   : > { %v3398_v60 = vpack.c.bf16 %v3334_v22, %v3331_v58  ;;  %v4494_v61 = vpop.f32.mrb[91].mxu0 }
0x1cfe   : > { %v4584_v61 = vld [vmem:[%s4931_s16 + $0x18] sm:$0xff]  }
0x1cff   : > { %v3403_v8 = vsel %vm2539_vm6, %v3398_v60, 0  ;;  %v4583_v60 = vld [vmem:[%s4931_s16 + $0x10] sm:$0xff]  }
0x1d00   : > { %4502 = vmatpush3.bf16.msra.mxu0 %v3403_v8  ;;  %v4101_v8 = vld [vmem:[%s5532_s24] ss:$0 sm:$0xff] }
0x1d01   : > { %4513 = vmatprep.subr.bf16.mxu0 %v4663_v4 }
0x1dc0   : > { %v3199_v63 = vpop.f32.mrb[80].mxu1 }
0x1dc1   : > { %v3205_v62 = vadd.f32 %v3199_v63, %v5296_v19  ;;  %v4475_v0 = vpop.f32.mrb[81].mxu1 }
0x1dc2   : > { %v3202_v1 = vpop.f32.mrb[82].mxu1 }
0x1dc3   : > { %v4476_v2 = vpop.f32.mrb[83].mxu1 }
0x1dc8   : > { %v3290_v7 = vpop.f32.mrb[84].mxu1 }
0x1dc9   : > { %v4487_v9 = vpop.f32.mrb[85].mxu1 }
0x1dca   : > { %v3293_v10 = vpop.f32.mrb[86].mxu1 }
0x1dcb   : > { %v3339_v11 = vpack.c.bf16 %v3293_v10, %v3290_v7  ;;  %v4488_v12 = vpop.f32.mrb[87].mxu1 }
0x1dcd   : > { %v3344_v13 = vsel %vm1147_vm3, %v3339_v11, 0 }
0x1dce   : > { %4496 = vmatpush3.bf16.xpose.msra.mxu1 %v3344_v13 }
0x1dcf   : > { %4507 = vmatprep.subr.bf16.mxu1 %v4663_v4 }
0x1dd5   : > { %4498 = vmatmul.mubr.msk.bf16.vlgmr.msra.gmra.mrb[88].mxu1 %vm1147_vm3, %v3338_v14 }
0x1dd6   : > { %4509 = vmatprep.mubr.msk.bf16.mxu1 %vm4664_vm2, %v4663_v4  ;;  %4508 = vmatpush3.bf16.msra.mxu1 %v3450_v29 }
0x1dd7   : > { %4521 = vmatprep.subr.bf16.mxu1 %v4663_v4 }
0x1ea8   : > { %v3380_v15 = vpop.f32.mrb[88].mxu1 }
0x1ea9   : > { %v3381_v16 = vadd.f32 %v5215_v46, %v3380_v15  ;;  %v4499_v17 = vpop.f32.mrb[89].mxu1 }
0x1eaa   : > { %v3383_v18 = vpop.f32.mrb[90].mxu1 }
0x1eab   : > { %v4500_v19 = vpop.f32.mrb[91].mxu1  ;;  %v3386_v20 = vsel %vm2522_vm5, %v3381_v16, -inf }
0x1eac   : > { %3387 = vmax.xlane.f32.xlu0 %v3386_v20 }
0x1f39   : > { %v3388_v6 = vpop.xlane.xlu0 %3387 }
0x1f3a   : > { %v3389_v23 = vsub.f32 %v3381_v16, %v3388_v6 }
0x1f3c   : > { %v3390_v25 = vmul.f32 1.442695, %v3389_v23 }
0x1f3e   : > { %4615 = vpow2.f32 %v3390_v25 }
0x1f48   : > { %v4616_v26 = vpop.eup %4615 }
0x1f49   : > { %v3392_v21 = vsel %vm2522_vm5, %v4616_v26, 0.0 }
0x1f4a   : > { %3393 = vadd.xlane.f32.xlu1 %v3392_v21 }
0x1fd7   : > { %v3394_v46 = vpop.xlane.xlu1 %3393 }
0x1fd8   : > { %4617 = vrcp.f32 %v3394_v46  ;;  %v4112_v46 = vld [vmem:[%s1113_s17] ss:$0 sm:$0xff] }
0x1fe2   : > { %v4618_v30 = vpop.eup %4617 }
0x1fe3   : > { %v3396_v31 = vmul.f32 %v4618_v30, %v4616_v26 }
0x1fe5   : > { %v3397_v28 = vpack.c.bf16 %v3396_v31, %v3396_v31 }
0x1fe7   : > { %4504 = vmatmul.mubr.msk.bf16.vlgmr.msra.gmra.mrb[92].mxu0 %vm2522_vm5, %v3397_v28 }
0x1fe8   : > { %4517 = vmatprep.mubr.msk.bf16.mxu0 %vm4664_vm2, %v4663_v4  ;;  %4514 = vmatpush3.bf16.msra.mxu0 %v4579_v50 }
0x1fe9   : > { %4515 = vmatprep.subr.bf16.mxu0 %v4663_v4 }
0x1fec   : > { %4516 = vmatpush3.bf16.msra.mxu0 %v4580_v24 }
0x20ba   : > { %v3439_v5 = vpop.f32.mrb[92].mxu0 }
0x20bb   : > { %v3445_v34 = vpack.c.bf16 %v3439_v5, %v3439_v5  ;;  %v4505_v35 = vpop.f32.mrb[93].mxu0 }
0x20bc   : > { %v3442_v36 = vpop.f32.mrb[94].mxu0 }
0x20bd   : > { %v4506_v37 = vpop.f32.mrb[95].mxu0  ;;  %4510 = vmatmul.mubr.msk.bf16.vlgmr.msra.gmra.mrb[92].mxu1 %vm1147_vm3, %v3445_v34 }
0x20be   : > { %4529 = vmatprep.mubr.msk.bf16.mxu1 %vm4664_vm2, %v4663_v4 }
0x2190   : > { %v3486_v38 = vpop.f32.mrb[92].mxu1 }
0x2191   : > { %v3492_v39 = vadd.f32 %v3486_v38, %v3205_v62  ;;  %v4511_v40 = vpop.f32.mrb[93].mxu1 }
0x2192   : > { %v3489_v41 = vpop.f32.mrb[94].mxu1 }
0x2193   : > { %v4512_v42 = vpop.f32.mrb[95].mxu1  ;;  %v3493_v43 = vadd.f32 %v3492_v39, %v5179_v32  ;;  %v4581_v32 = vld [vmem:[%s4931_s16] sm:$0xff]  }
0x2194   : > { %4522 = vmatpush3.bf16.msra.mxu1 %v4581_v32 }
0x2195   : > { %v3496_v44 = vsel %vm2280_vm4, %v3493_v43, 0.0  ;;  %4523 = vmatprep.subr.bf16.mxu1 %v4663_v4 }
0x2196   : > { %3497 = vadd.xlane.f32.xlu0 %v3496_v44 }
0x2198   : > { %4524 = vmatpush3.bf16.msra.mxu1 %v4582_v51 }
0x2199   : > { %4525 = vmatprep.subr.bf16.mxu1 %v4663_v4 }
0x219c   : > { %4526 = vmatpush3.bf16.msra.mxu1 %v4583_v60 }
0x219d   : > { %4527 = vmatprep.subr.bf16.mxu1 %v4663_v4  ;;  %v4105_v4 = vld [vmem:[%s1107_s15] ss:$0 sm:$0xff] }
0x21a0   : > { %4528 = vmatpush3.bf16.msra.mxu1 %v4584_v61 }
0x2223   : > { %v3498_v47 = vpop.xlane.xlu0 %3497 }
0x2224   : > { %v3499_v3 = vmul.f32 0.03125, %v3498_v47 }
0x2226   : > { %v3500_v48 = vsub.f32 %v3493_v43, %v3499_v3 }
0x2228   : > { %v3501_v49 = vmul.f32 %v3500_v48, %v3500_v48 }
0x222a   : > { %v3502_v33 = vsel %vm2280_vm4, %v3501_v49, 0.0 }
0x222b   : > { %3503 = vadd.xlane.f32.xlu0 %v3502_v33 }
0x22b8   : > { %v3504_v52 = vpop.xlane.xlu0 %3503 }
0x22b9   : > { %v3505_v53 = vmul.f32 0.03125, %v3504_v52 }
0x22bb   : > { %v3506_v54 = vadd.f32 1e-05, %v3505_v53 }
0x22bd   : > { %4619 = vrsqrt.f32 %v3506_v54 }
0x22c7   : > { %v4620_v45 = vpop.eup %4619 }
0x22c8   : > { %v3508_v56 = vmul.f32 %v4620_v45, %v3500_v48 }
0x22ca   : > { %v3515_v58 = vmul.f32 %v4099_v55, %v3508_v56 }
0x22cc   : > { %v3522_v59 = vadd.f32 %v4100_v57, %v3515_v58 }
0x22ce   : > { %v3527_v22 = vpack.c.bf16 %v3522_v59, %v3522_v59 }
0x22d0   : > { %4518 = vmatmul.mubr.msk.bf16.vlgmr.msra.gmra.mrb[96].mxu0 %vm2280_vm4, %v3527_v22 }
0x23a3   : > { %v3584_v63 = vpop.f32.mrb[96].mxu0 }
0x23a4   : > { %v3585_v62 = vadd.f32 %v4101_v8, %v3584_v63  ;;  %v4519_v0 = vpop.f32.mrb[97].mxu0 }
0x23a5   : > { %v3587_v1 = vpop.f32.mrb[98].mxu0 }
0x23a6   : > { %v3590_v2 = vmax.f32 %v3585_v62, 0.0  ;;  %v4520_v7 = vpop.f32.mrb[99].mxu0 }
0x23a8   : > { %v3599_v9 = vpack.c.bf16 %v3590_v2, %v3590_v2 }
0x23aa   : > { %4530 = vmatmul.mubr.msk.bf16.vlgmr.msra.gmra.mrb[96].mxu1 %vm3631_vm7, %v3599_v9 }
0x247d   : > { %v3669_v10 = vpop.f32.mrb[96].mxu1 }
0x247e   : > { %v3670_v11 = vadd.f32 %v4105_v4, %v3669_v10  ;;  %v4531_v12 = vpop.f32.mrb[97].mxu1 }
0x247f   : > { %v3672_v13 = vpop.f32.mrb[98].mxu1 }
0x2480   : > { %v4532_v14 = vpop.f32.mrb[99].mxu1  ;;  %v3675_v15 = vadd.f32 %v3670_v11, %v3522_v59 }
0x2482   : > { %v3678_v16 = vsel %vm2280_vm4, %v3675_v15, 0.0 }
0x2483   : > { %3679 = vadd.xlane.f32.xlu0 %v3678_v16 }
0x2510   : > { %v3680_v17 = vpop.xlane.xlu0 %3679 }
0x2511   : > { %v3681_v18 = vmul.f32 0.03125, %v3680_v17 }
0x2513   : > { %v3682_v19 = vsub.f32 %v3675_v15, %v3681_v18 }
0x2515   : > { %v3683_v20 = vmul.f32 %v3682_v19, %v3682_v19 }
0x2517   : > { %v3684_v6 = vsel %vm2280_vm4, %v3683_v20, 0.0 }
0x2518   : > { %3685 = vadd.xlane.f32.xlu0 %v3684_v6 }
0x25a5   : > { %v3686_v23 = vpop.xlane.xlu0 %3685 }
0x25a6   : > { %v3687_v25 = vmul.f32 0.03125, %v3686_v23 }
0x25a8   : > { %v3688_v26 = vadd.f32 1e-05, %v3687_v25 }
0x25aa   : > { %4621 = vrsqrt.f32 %v3688_v26 }
0x25b4   : > { %v4622_v21 = vpop.eup %4621 }
0x25b5   : > { %v3690_v29 = vmul.f32 %v4622_v21, %v3682_v19  ;;  %3709 = sbr.rel (%p4113_p8) target bundleno = 9662 (0x25be), region = 124 }
0x25b7   : > { %v3697_v30 = vmul.f32 %v4111_v27, %v3690_v29 }
0x25b9   : > { %v3704_v31 = vadd.f32 %v4112_v46, %v3697_v30 }
0x25bb   : > { %3705 = vst.msk [vmem:[#allocation2] sm:$0xff] %vm2280_vm4, %v3704_v31  ;;  %v3710_v28 = vpack.c.bf16 (!%p4113_p8), %v3704_v31, %v3704_v31 }
0x25bd   : > { %3712 = vst.msk [vmem:[%s4946_s27] sm:$0xf] %vm3711_vm8, %v3710_v28 }
0x25be PF: > { %s5537_s10 = sld [smem:[#allocation6_spill]]  ;;  %s5538_s5 = sld [smem:[#allocation4_spill]] }
0x25bf   : > { %s5539_s26 = sld [smem:[#allocation5_spill]]  ;;  %s5540_s27 = sld [smem:[#allocation7_spill]] }
0x25c0   : > { %s5541_s28 = sld [smem:[#allocation8_spill]] }
0x25c4   : > { %s34_s6 = sadd.s32 1, %s5537_s10  }
0x25c5   : > { %p31_p9 = scmp.ge.s32.totalorder %s34_s6, 6  }
0x25c7   :  { %33 = sbr.rel (!%p31_p9) target bundleno = 23 (0x17), region = 223 }

</bundles_post_ra>
